<compile_context>
chip_gen: v5e
topology: v5e:2x2
jax: 0.10.0
libtpu: 0.0.40
codegen_flags: <defaults>
</compile_context>

<pallas_src>
import functools
import math

import jax
import jax.numpy as jnp
from jax.experimental import pallas as pl
from jax.experimental.pallas import tpu as pltpu


# 48 MiB: above the scoped defaults, safely under v7x's 64 MiB physical VMEM
# (the streamed scheme needs ~2 layers of weights + activations at a time).
_VMEM_LIMIT = 48 * 1024 * 1024


def _pick_batch_tile(batch, seq, target_rows=256):
    """Smallest divisor bt of `batch` with bt*seq >= target_rows (fills the
    MXU M-dimension); falls back to the whole batch if nothing reaches it."""
    for cand in range(1, batch + 1):
        if batch % cand == 0 and cand * seq >= target_rows:
            return cand
    return batch


# ---------------------------------------------------------------------------
# Fused kernel: embedding -> 6 x encoder layer -> final LayerNorm -> fc
# Grid: (num_batch_tiles, n_layers); the residual lives in VMEM scratch.
# ---------------------------------------------------------------------------
def _tfae_kernel(x_ref, embw_ref, embb_ref, pos_ref,
                 wqkv_ref, bqkv_ref, wo_ref, bo_ref, ln1g_ref, ln1b_ref,
                 w1_ref, b1_ref, w2_ref, b2_ref, ln2g_ref, ln2b_ref,
                 lnfg_ref, lnfb_ref, fcw_ref, fcb_ref,
                 o_ref, h_ref, *, nhead, eps=1e-5):
    l = pl.program_id(1)
    n_layers = pl.num_programs(1)

    bt, S, F = x_ref.shape
    D = embw_ref.shape[1]
    dh = D // nhead
    N = bt * S
    scale = 1.0 / math.sqrt(dh)

    # ---- prologue (layer 0 only): embedding linear + positional add ----
    @pl.when(l == 0)
    def _():
        xin = x_ref[...].reshape(N, F)
        e = jnp.dot(xin, embw_ref[...], preferred_element_type=jnp.float32)
        h_ref[...] = e.reshape(bt, S, D) + embb_ref[...] + pos_ref[...]

    x = h_ref[...].reshape(N, D)          # f32 residual stream

    # ---- self-attention: fused QKV projection (one weight, one matmul) ----
    qkv = jnp.dot(x, wqkv_ref[...], preferred_element_type=jnp.float32) \
        + bqkv_ref[...]
    q = qkv[:, :D].reshape(bt, S, D)
    k = qkv[:, D:2 * D].reshape(bt, S, D)
    v = qkv[:, 2 * D:].reshape(bt, S, D)

    heads = []
    for hd in range(nhead):               # static unroll (nhead == 2)
        sl = slice(hd * dh, (hd + 1) * dh)
        s = jnp.einsum("bqd,bkd->bqk", q[:, :, sl], k[:, :, sl],
                       preferred_element_type=jnp.float32) * scale
        s = s - jnp.max(s, axis=-1, keepdims=True)
        p = jnp.exp(s)
        p = p / jnp.sum(p, axis=-1, keepdims=True)
        heads.append(jnp.einsum("bqk,bkd->bqd", p, v[:, :, sl],
                                preferred_element_type=jnp.float32))
    ao = jnp.concatenate(heads, axis=-1).reshape(N, D)
    ao = jnp.dot(ao, wo_ref[...], preferred_element_type=jnp.float32) \
        + bo_ref[...]

    # ---- residual + LayerNorm 1 ----
    h1 = x + ao
    mu1 = jnp.mean(h1, axis=-1, keepdims=True)
    var1 = jnp.mean(jnp.square(h1 - mu1), axis=-1, keepdims=True)
    x1 = (h1 - mu1) * jax.lax.rsqrt(var1 + eps) * ln1g_ref[...] + ln1b_ref[...]

    # ---- feed-forward: linear + ReLU + linear ----
    f1 = jnp.maximum(
        jnp.dot(x1, w1_ref[...], preferred_element_type=jnp.float32)
        + b1_ref[...], 0.0)
    f2 = jnp.dot(f1, w2_ref[...], preferred_element_type=jnp.float32) \
        + b2_ref[...]

    # ---- residual + LayerNorm 2 ----
    h2 = x1 + f2
    mu2 = jnp.mean(h2, axis=-1, keepdims=True)
    var2 = jnp.mean(jnp.square(h2 - mu2), axis=-1, keepdims=True)
    x2 = (h2 - mu2) * jax.lax.rsqrt(var2 + eps) * ln2g_ref[...] + ln2b_ref[...]

    h_ref[...] = x2.reshape(bt, S, D)     # carry residual to next layer

    # ---- epilogue (last layer only): final LayerNorm + fc ----
    @pl.when(l == n_layers - 1)
    def _():
        muf = jnp.mean(x2, axis=-1, keepdims=True)
        varf = jnp.mean(jnp.square(x2 - muf), axis=-1, keepdims=True)
        xf = (x2 - muf) * jax.lax.rsqrt(varf + eps) * lnfg_ref[...] \
            + lnfb_ref[...]
        y = jnp.dot(xf, fcw_ref[...], preferred_element_type=jnp.float32) \
            + fcb_ref[...]
        o_ref[...] = y.reshape(bt, S, F).astype(o_ref.dtype)


# ---------------------------------------------------------------------------
# Wrapper
# ---------------------------------------------------------------------------
def tfae_forward(x, p, *, nhead=2, batch_tile=None):
    B, S, F = x.shape
    D = p["emb_w"].shape[1]
    L, _, dff = p["w1"].shape

    bt = batch_tile if batch_tile is not None else _pick_batch_tile(B, S)
    assert B % bt == 0
    nb = B // bt

    xmap = lambda i, l: (i, 0, 0)         # batch-tiled activations / output
    c2 = lambda i, l: (0, 0)              # constant 2-D params (fetched once)
    l3 = lambda i, l: (l, 0, 0)           # layer-stacked weights (streamed)

    in_specs = [
        pl.BlockSpec((bt, S, F), xmap),           # x
        pl.BlockSpec((F, D), c2),                 # emb_w
        pl.BlockSpec((1, D), c2),                 # emb_b
        pl.BlockSpec((S, D), c2),                 # pos[:S]
        pl.BlockSpec((None, D, 3 * D), l3),       # wqkv
        pl.BlockSpec((None, 1, 3 * D), l3),       # bqkv
        pl.BlockSpec((None, D, D), l3),           # wo
        pl.BlockSpec((None, 1, D), l3),           # bo
        pl.BlockSpec((None, 1, D), l3),           # ln1_g
        pl.BlockSpec((None, 1, D), l3),           # ln1_b
        pl.BlockSpec((None, D, dff), l3),         # w1
        pl.BlockSpec((None, 1, dff), l3),         # b1
        pl.BlockSpec((None, dff, D), l3),         # w2
        pl.BlockSpec((None, 1, D), l3),           # b2
        pl.BlockSpec((None, 1, D), l3),           # ln2_g
        pl.BlockSpec((None, 1, D), l3),           # ln2_b
        pl.BlockSpec((1, D), c2),                 # lnf_g
        pl.BlockSpec((1, D), c2),                 # lnf_b
        pl.BlockSpec((D, F), c2),                 # fc_w
        pl.BlockSpec((1, F), c2),                 # fc_b
    ]

    # Megacore split only when each core still gets a full-width MXU tile;
    # otherwise avoid duplicating the streamed weight DMA across cores.
    ds = ("parallel", "arbitrary") if (nb >= 2 and bt * S >= 256) \
        else ("arbitrary", "arbitrary")

    y = pl.pallas_call(
        functools.partial(_tfae_kernel, nhead=nhead),
        out_shape=jax.ShapeDtypeStruct((B, S, F), jnp.float32),
        grid=(nb, L),
        in_specs=in_specs,
        out_specs=pl.BlockSpec((bt, S, F), xmap),
        scratch_shapes=[pltpu.VMEM((bt, S, D), jnp.float32)],
        compiler_params=pltpu.CompilerParams(dimension_semantics=ds,
                                             vmem_limit_bytes=_VMEM_LIMIT),
    )(x, p["emb_w"], p["emb_b"], p["pos"][:S],
      p["wqkv"], p["bqkv"], p["wo"], p["bo"], p["ln1_g"], p["ln1_b"],
      p["w1"], p["b1"], p["w2"], p["b2"], p["ln2_g"], p["ln2_b"],
      p["lnf_g"], p["lnf_b"], p["fc_w"], p["fc_b"])

    # (B, S, 16) -> (B, 16, S): cheap XLA permute of the small final result.
    return y.transpose(0, 2, 1)


# ---------------------------------------------------------------------------
# Parameter handling
# ---------------------------------------------------------------------------
def prepare_params(raw):
    """One-time, outside-jit conversion to the stacked kernel-ready layout.
    No per-forward weight reshapes/casts remain inside the jitted forward."""
    D = raw["emb_w"].shape[1]
    dff = raw["layers"][0]["w1"].shape[1]

    st = lambda k: jnp.stack([lp[k] for lp in raw["layers"]])
    stb = lambda k, w: jnp.stack([lp[k].reshape(1, w) for lp in raw["layers"]])

    return {
        "emb_w": raw["emb_w"],                    # (16, D)
        "emb_b": raw["emb_b"].reshape(1, D),
        "pos": raw["pos"],                        # (maxlen, D)
        "wqkv": st("wqkv"),                       # (L, D, 3D)
        "bqkv": stb("bqkv", 3 * D),
        "wo": st("wo"),
        "bo": stb("bo", D),
        "ln1_g": stb("ln1_g", D),
        "ln1_b": stb("ln1_b", D),
        "w1": st("w1"),                           # (L, D, dff)
        "b1": stb("b1", dff),
        "w2": st("w2"),                           # (L, dff, D)
        "b2": stb("b2", D),
        "ln2_g": stb("ln2_g", D),
        "ln2_b": stb("ln2_b", D),
        "lnf_g": raw["lnf_g"].reshape(1, D),
        "lnf_b": raw["lnf_b"].reshape(1, D),
        "fc_w": raw["fc_w"],                      # (D, 16), x @ W layout
        "fc_b": raw["fc_b"].reshape(1, 16),
    }


def init_params(key, d_model, maxlen, n_layers=6, d_ff=2048):
    keys = jax.random.split(key, 4)

    def nrm(k, shape):
        return 0.02 * jax.random.normal(k, shape, jnp.float32)

    params = {
        "emb_w": nrm(keys[0], (16, d_model)),
        "emb_b": nrm(keys[1], (d_model,)),
        "pos": nrm(keys[2], (maxlen, d_model)),
        "fc_w": nrm(keys[3], (d_model, 16)),
        "fc_b": jnp.zeros((16,), jnp.float32),
        "lnf_g": jnp.ones((d_model,), jnp.float32),
        "lnf_b": jnp.zeros((d_model,), jnp.float32),
        "layers": [],
    }
    for l in range(n_layers):
        ks = jax.random.split(jax.random.fold_in(key, 100 + l), 6)
        params["layers"].append({
            "wqkv": nrm(ks[0], (d_model, 3 * d_model)),
            "bqkv": nrm(ks[1], (3 * d_model,)),
            "wo": nrm(ks[2], (d_model, d_model)),
            "bo": jnp.zeros((d_model,), jnp.float32),
            "w1": nrm(ks[3], (d_model, d_ff)),
            "b1": nrm(ks[4], (d_ff,)),
            "w2": nrm(ks[5], (d_ff, d_model)),
            "b2": jnp.zeros((d_model,), jnp.float32),
            "ln1_g": jnp.ones((d_model,), jnp.float32),
            "ln1_b": jnp.zeros((d_model,), jnp.float32),
            "ln2_g": jnp.ones((d_model,), jnp.float32),
            "ln2_b": jnp.zeros((d_model,), jnp.float32),
        })
    return params


if __name__ == "__main__":
    B, S = 2, 8            # batch, sequence length
    D = 64                 # model_size (module default 512; small for test)
    MAXLEN = 128
    NHEAD = 2
    D_FF = 256             # dim_feedforward (module default 2048; small test)

    key = jax.random.PRNGKey(0)
    kx, kp = jax.random.split(key)
    x = jax.random.normal(kx, (B, S, 16), jnp.float32)

    raw_params = init_params(kp, D, MAXLEN, n_layers=6, d_ff=D_FF)
    params = prepare_params(raw_params)     # one-time, outside jit

    fwd = jax.jit(functools.partial(tfae_forward, nhead=NHEAD))
    out = jax.block_until_ready(fwd(x, params))

    assert out.shape == (B, 16, S), out.shape
    assert bool(jnp.all(jnp.isfinite(out)))
    print("KERNEL_OK")
</pallas_src>

<mosaic_0001>
module attributes {stable_mosaic.version = 11 : i64} {
  func.func @_tfae_kernel(%arg0: i32, %arg1: i32, %arg2: memref<2x8x16xf32, #tpu.memory_space<vmem>>, %arg3: memref<16x64xf32, #tpu.memory_space<vmem>>, %arg4: memref<1x64xf32, #tpu.memory_space<vmem>>, %arg5: memref<8x64xf32, #tpu.memory_space<vmem>>, %arg6: memref<1x64x192xf32, #tpu.memory_space<vmem>>, %arg7: memref<1x1x192xf32, #tpu.memory_space<vmem>>, %arg8: memref<1x64x64xf32, #tpu.memory_space<vmem>>, %arg9: memref<1x1x64xf32, #tpu.memory_space<vmem>>, %arg10: memref<1x1x64xf32, #tpu.memory_space<vmem>>, %arg11: memref<1x1x64xf32, #tpu.memory_space<vmem>>, %arg12: memref<1x64x256xf32, #tpu.memory_space<vmem>>, %arg13: memref<1x1x256xf32, #tpu.memory_space<vmem>>, %arg14: memref<1x256x64xf32, #tpu.memory_space<vmem>>, %arg15: memref<1x1x64xf32, #tpu.memory_space<vmem>>, %arg16: memref<1x1x64xf32, #tpu.memory_space<vmem>>, %arg17: memref<1x1x64xf32, #tpu.memory_space<vmem>>, %arg18: memref<1x64xf32, #tpu.memory_space<vmem>>, %arg19: memref<1x64xf32, #tpu.memory_space<vmem>>, %arg20: memref<64x16xf32, #tpu.memory_space<vmem>>, %arg21: memref<1x16xf32, #tpu.memory_space<vmem>>, %arg22: memref<2x8x16xf32, #tpu.memory_space<vmem>>, %arg23: memref<2x8x64xf32, #tpu.memory_space<vmem>>) attributes {dimension_semantics = [#tpu.dimension_semantics<arbitrary>, #tpu.dimension_semantics<arbitrary>], iteration_bounds = array<i64: 1, 6>, scalar_prefetch = 0 : i64, scratch_operands = 1 : i64, tpu.core_type = #tpu.core_type<tc>, window_params = [{transform_indices = @transform_0, window_bounds = array<i64: 2, 8, 16>}, {pipeline_mode = #tpu.pipeline_mode<synchronous>, transform_indices = @transform_1, window_bounds = array<i64: 16, 64>}, {pipeline_mode = #tpu.pipeline_mode<synchronous>, transform_indices = @transform_2, window_bounds = array<i64: 1, 64>}, {pipeline_mode = #tpu.pipeline_mode<synchronous>, transform_indices = @transform_3, window_bounds = array<i64: 8, 64>}, {transform_indices = @transform_4, window_bounds = array<i64: 1, 64, 192>}, {transform_indices = @transform_5, window_bounds = array<i64: 1, 1, 192>}, {transform_indices = @transform_6, window_bounds = array<i64: 1, 64, 64>}, {transform_indices = @transform_7, window_bounds = array<i64: 1, 1, 64>}, {transform_indices = @transform_8, window_bounds = array<i64: 1, 1, 64>}, {transform_indices = @transform_9, window_bounds = array<i64: 1, 1, 64>}, {transform_indices = @transform_10, window_bounds = array<i64: 1, 64, 256>}, {transform_indices = @transform_11, window_bounds = array<i64: 1, 1, 256>}, {transform_indices = @transform_12, window_bounds = array<i64: 1, 256, 64>}, {transform_indices = @transform_13, window_bounds = array<i64: 1, 1, 64>}, {transform_indices = @transform_14, window_bounds = array<i64: 1, 1, 64>}, {transform_indices = @transform_15, window_bounds = array<i64: 1, 1, 64>}, {pipeline_mode = #tpu.pipeline_mode<synchronous>, transform_indices = @transform_16, window_bounds = array<i64: 1, 64>}, {pipeline_mode = #tpu.pipeline_mode<synchronous>, transform_indices = @transform_17, window_bounds = array<i64: 1, 64>}, {pipeline_mode = #tpu.pipeline_mode<synchronous>, transform_indices = @transform_18, window_bounds = array<i64: 64, 16>}, {pipeline_mode = #tpu.pipeline_mode<synchronous>, transform_indices = @transform_19, window_bounds = array<i64: 1, 16>}, {transform_indices = @transform_20, window_bounds = array<i64: 2, 8, 16>}]} {
    %c0_i32 = arith.constant 0 : i32
    %0 = arith.cmpi eq, %arg1, %c0_i32 : i32
    %1 = arith.extui %0 : i1 to i32
    %c0_i32_0 = arith.constant 0 : i32
    %2 = arith.cmpi ne, %1, %c0_i32_0 : i32
    scf.if %2 {
      %c0_67 = arith.constant 0 : index
      %c0_68 = arith.constant 0 : index
      %c0_69 = arith.constant 0 : index
      %134 = vector.load %arg2[%c0_67, %c0_68, %c0_69] : memref<2x8x16xf32, #tpu.memory_space<vmem>>, vector<2x8x16xf32>
      %135 = vector.shape_cast %134 : vector<2x8x16xf32> to vector<16x16xf32>
      %c0_70 = arith.constant 0 : index
      %c0_71 = arith.constant 0 : index
      %136 = vector.load %arg3[%c0_70, %c0_71] : memref<16x64xf32, #tpu.memory_space<vmem>>, vector<16x64xf32>
      %cst_72 = arith.constant dense<0.000000e+00> : vector<16x64xf32>
      %137 = tpu.matmul %135, %136, %cst_72 {dimension_numbers = #tpu.dot_dimension_numbers<[1], [0], [0], [1], [0, 0, 1, 1], [], []>} : vector<16x16xf32>, vector<16x64xf32>, vector<16x64xf32> -> vector<16x64xf32>
      %138 = vector.shape_cast %137 : vector<16x64xf32> to vector<2x8x64xf32>
      %c0_73 = arith.constant 0 : index
      %c0_74 = arith.constant 0 : index
      %139 = vector.load %arg4[%c0_73, %c0_74] : memref<1x64xf32, #tpu.memory_space<vmem>>, vector<1x64xf32>
      %140 = vector.shape_cast %139 : vector<1x64xf32> to vector<1x1x64xf32>
      %141 = vector.broadcast %140 : vector<1x1x64xf32> to vector<2x8x64xf32>
      %142 = arith.addf %138, %141 : vector<2x8x64xf32>
      %c0_75 = arith.constant 0 : index
      %c0_76 = arith.constant 0 : index
      %143 = vector.load %arg5[%c0_75, %c0_76] : memref<8x64xf32, #tpu.memory_space<vmem>>, vector<8x64xf32>
      %144 = vector.shape_cast %143 : vector<8x64xf32> to vector<1x8x64xf32>
      %145 = vector.broadcast %144 : vector<1x8x64xf32> to vector<2x8x64xf32>
      %146 = arith.addf %142, %145 : vector<2x8x64xf32>
      %c0_77 = arith.constant 0 : index
      %c0_78 = arith.constant 0 : index
      %c0_79 = arith.constant 0 : index
      %147 = vector.load %arg23[%c0_77, %c0_78, %c0_79] : memref<2x8x64xf32, #tpu.memory_space<vmem>>, vector<2x8x64xf32>
      tpu.vector_store %arg23[%c0_77, %c0_78, %c0_79], %146 {strides = array<i32>} : memref<2x8x64xf32, #tpu.memory_space<vmem>>, vector<2x8x64xf32>,
    } else {
    }
    %c0 = arith.constant 0 : index
    %c0_1 = arith.constant 0 : index
    %c0_2 = arith.constant 0 : index
    %3 = vector.load %arg23[%c0, %c0_1, %c0_2] : memref<2x8x64xf32, #tpu.memory_space<vmem>>, vector<2x8x64xf32>
    %4 = vector.shape_cast %3 : vector<2x8x64xf32> to vector<16x64xf32>
    %c0_3 = arith.constant 0 : index
    %c0_4 = arith.constant 0 : index
    %c0_5 = arith.constant 0 : index
    %5 = vector.load %arg6[%c0_3, %c0_4, %c0_5] : memref<1x64x192xf32, #tpu.memory_space<vmem>>, vector<1x64x192xf32>
    %6 = vector.shape_cast %5 : vector<1x64x192xf32> to vector<64x192xf32>
    %cst = arith.constant dense<0.000000e+00> : vector<16x192xf32>
    %7 = tpu.matmul %4, %6, %cst {dimension_numbers = #tpu.dot_dimension_numbers<[1], [0], [0], [1], [0, 0, 1, 1], [], []>} : vector<16x64xf32>, vector<64x192xf32>, vector<16x192xf32> -> vector<16x192xf32>
    %c0_6 = arith.constant 0 : index
    %c0_7 = arith.constant 0 : index
    %c0_8 = arith.constant 0 : index
    %8 = vector.load %arg7[%c0_6, %c0_7, %c0_8] : memref<1x1x192xf32, #tpu.memory_space<vmem>>, vector<1x1x192xf32>
    %9 = vector.shape_cast %8 : vector<1x1x192xf32> to vector<1x192xf32>
    %10 = vector.broadcast %9 : vector<1x192xf32> to vector<16x192xf32>
    %11 = arith.addf %7, %10 : vector<16x192xf32>
    %12 = vector.extract_strided_slice %11 {offsets = [0, 0], sizes = [16, 64], strides = [1, 1]} : vector<16x192xf32> to vector<16x64xf32>
    %13 = vector.shape_cast %12 : vector<16x64xf32> to vector<2x8x64xf32>
    %14 = vector.extract_strided_slice %11 {offsets = [0, 64], sizes = [16, 64], strides = [1, 1]} : vector<16x192xf32> to vector<16x64xf32>
    %15 = vector.shape_cast %14 : vector<16x64xf32> to vector<2x8x64xf32>
    %16 = vector.extract_strided_slice %11 {offsets = [0, 128], sizes = [16, 64], strides = [1, 1]} : vector<16x192xf32> to vector<16x64xf32>
    %17 = vector.shape_cast %16 : vector<16x64xf32> to vector<2x8x64xf32>
    %18 = vector.extract_strided_slice %13 {offsets = [0, 0, 0], sizes = [2, 8, 32], strides = [1, 1, 1]} : vector<2x8x64xf32> to vector<2x8x32xf32>
    %19 = vector.extract_strided_slice %15 {offsets = [0, 0, 0], sizes = [2, 8, 32], strides = [1, 1, 1]} : vector<2x8x64xf32> to vector<2x8x32xf32>
    "tpu.trace_start"() <{level = 10 : i32, message = "bqd,bkd->bqk"}> : () -> ()
    %cst_9 = arith.constant dense<0.000000e+00> : vector<2x8x8xf32>
    %20 = tpu.matmul %18, %19, %cst_9 {dimension_numbers = #tpu.dot_dimension_numbers<[2], [2], [1], [1], [0, 0, 0, 1, 1, 1], [0], [0]>} : vector<2x8x32xf32>, vector<2x8x32xf32>, vector<2x8x8xf32> -> vector<2x8x8xf32>
    "tpu.trace_stop"() : () -> ()
    %cst_10 = arith.constant 0.176776692 : f32
    %21 = vector.broadcast %cst_10 : f32 to vector<2x8x8xf32>
    %22 = arith.mulf %20, %21 : vector<2x8x8xf32>
    %cst_11 = arith.constant dense<0xFF800000> : vector<2x8xf32>
    %23 = vector.multi_reduction <maximumf>, %22, %cst_11 [2] : vector<2x8x8xf32> to vector<2x8xf32>
    %24 = vector.shape_cast %23 : vector<2x8xf32> to vector<2x8x1xf32>
    %25 = vector.broadcast %24 : vector<2x8x1xf32> to vector<2x8x8xf32>
    %26 = arith.subf %22, %25 : vector<2x8x8xf32>
    %27 = math.exp %26 : vector<2x8x8xf32>
    %cst_12 = arith.constant dense<0.000000e+00> : vector<2x8xf32>
    %28 = vector.multi_reduction <add>, %27, %cst_12 [2] : vector<2x8x8xf32> to vector<2x8xf32>
    %29 = vector.shape_cast %28 : vector<2x8xf32> to vector<2x8x1xf32>
    %30 = vector.broadcast %29 : vector<2x8x1xf32> to vector<2x8x8xf32>
    %31 = arith.divf %27, %30 : vector<2x8x8xf32>
    %32 = vector.extract_strided_slice %17 {offsets = [0, 0, 0], sizes = [2, 8, 32], strides = [1, 1, 1]} : vector<2x8x64xf32> to vector<2x8x32xf32>
    "tpu.trace_start"() <{level = 10 : i32, message = "bqk,bkd->bqd"}> : () -> ()
    %cst_13 = arith.constant dense<0.000000e+00> : vector<2x8x32xf32>
    %33 = tpu.matmul %31, %32, %cst_13 {dimension_numbers = #tpu.dot_dimension_numbers<[2], [1], [1], [2], [0, 0, 0, 1, 1, 2], [0], [0]>} : vector<2x8x8xf32>, vector<2x8x32xf32>, vector<2x8x32xf32> -> vector<2x8x32xf32>
    "tpu.trace_stop"() : () -> ()
    %34 = vector.extract_strided_slice %13 {offsets = [0, 0, 32], sizes = [2, 8, 32], strides = [1, 1, 1]} : vector<2x8x64xf32> to vector<2x8x32xf32>
    %35 = vector.extract_strided_slice %15 {offsets = [0, 0, 32], sizes = [2, 8, 32], strides = [1, 1, 1]} : vector<2x8x64xf32> to vector<2x8x32xf32>
    "tpu.trace_start"() <{level = 10 : i32, message = "bqd,bkd->bqk"}> : () -> ()
    %cst_14 = arith.constant dense<0.000000e+00> : vector<2x8x8xf32>
    %36 = tpu.matmul %34, %35, %cst_14 {dimension_numbers = #tpu.dot_dimension_numbers<[2], [2], [1], [1], [0, 0, 0, 1, 1, 1], [0], [0]>} : vector<2x8x32xf32>, vector<2x8x32xf32>, vector<2x8x8xf32> -> vector<2x8x8xf32>
    "tpu.trace_stop"() : () -> ()
    %cst_15 = arith.constant 0.176776692 : f32
    %37 = vector.broadcast %cst_15 : f32 to vector<2x8x8xf32>
    %38 = arith.mulf %36, %37 : vector<2x8x8xf32>
    %cst_16 = arith.constant dense<0xFF800000> : vector<2x8xf32>
    %39 = vector.multi_reduction <maximumf>, %38, %cst_16 [2] : vector<2x8x8xf32> to vector<2x8xf32>
    %40 = vector.shape_cast %39 : vector<2x8xf32> to vector<2x8x1xf32>
    %41 = vector.broadcast %40 : vector<2x8x1xf32> to vector<2x8x8xf32>
    %42 = arith.subf %38, %41 : vector<2x8x8xf32>
    %43 = math.exp %42 : vector<2x8x8xf32>
    %cst_17 = arith.constant dense<0.000000e+00> : vector<2x8xf32>
    %44 = vector.multi_reduction <add>, %43, %cst_17 [2] : vector<2x8x8xf32> to vector<2x8xf32>
    %45 = vector.shape_cast %44 : vector<2x8xf32> to vector<2x8x1xf32>
    %46 = vector.broadcast %45 : vector<2x8x1xf32> to vector<2x8x8xf32>
    %47 = arith.divf %43, %46 : vector<2x8x8xf32>
    %48 = vector.extract_strided_slice %17 {offsets = [0, 0, 32], sizes = [2, 8, 32], strides = [1, 1, 1]} : vector<2x8x64xf32> to vector<2x8x32xf32>
    "tpu.trace_start"() <{level = 10 : i32, message = "bqk,bkd->bqd"}> : () -> ()
    %cst_18 = arith.constant dense<0.000000e+00> : vector<2x8x32xf32>
    %49 = tpu.matmul %47, %48, %cst_18 {dimension_numbers = #tpu.dot_dimension_numbers<[2], [1], [1], [2], [0, 0, 0, 1, 1, 2], [0], [0]>} : vector<2x8x8xf32>, vector<2x8x32xf32>, vector<2x8x32xf32> -> vector<2x8x32xf32>
    "tpu.trace_stop"() : () -> ()
    %50 = tpu.concatenate %33, %49 in 2 : vector<2x8x32xf32>, vector<2x8x32xf32> -> vector<2x8x64xf32>
    %51 = vector.shape_cast %50 : vector<2x8x64xf32> to vector<16x64xf32>
    %c0_19 = arith.constant 0 : index
    %c0_20 = arith.constant 0 : index
    %c0_21 = arith.constant 0 : index
    %52 = vector.load %arg8[%c0_19, %c0_20, %c0_21] : memref<1x64x64xf32, #tpu.memory_space<vmem>>, vector<1x64x64xf32>
    %53 = vector.shape_cast %52 : vector<1x64x64xf32> to vector<64x64xf32>
    %cst_22 = arith.constant dense<0.000000e+00> : vector<16x64xf32>
    %54 = tpu.matmul %51, %53, %cst_22 {dimension_numbers = #tpu.dot_dimension_numbers<[1], [0], [0], [1], [0, 0, 1, 1], [], []>} : vector<16x64xf32>, vector<64x64xf32>, vector<16x64xf32> -> vector<16x64xf32>
    %c0_23 = arith.constant 0 : index
    %c0_24 = arith.constant 0 : index
    %c0_25 = arith.constant 0 : index
    %55 = vector.load %arg9[%c0_23, %c0_24, %c0_25] : memref<1x1x64xf32, #tpu.memory_space<vmem>>, vector<1x1x64xf32>
    %56 = vector.shape_cast %55 : vector<1x1x64xf32> to vector<1x64xf32>
    %57 = vector.broadcast %56 : vector<1x64xf32> to vector<16x64xf32>
    %58 = arith.addf %54, %57 : vector<16x64xf32>
    %59 = arith.addf %4, %58 : vector<16x64xf32>
    %cst_26 = arith.constant dense<0.000000e+00> : vector<16xf32>
    %60 = vector.multi_reduction <add>, %59, %cst_26 [1] : vector<16x64xf32> to vector<16xf32>
    %61 = vector.shape_cast %60 : vector<16xf32> to vector<16x1xf32>
    %cst_27 = arith.constant 6.400000e+01 : f32
    %62 = vector.broadcast %cst_27 : f32 to vector<16x1xf32>
    %63 = arith.divf %61, %62 : vector<16x1xf32>
    %64 = vector.broadcast %63 : vector<16x1xf32> to vector<16x64xf32>
    %65 = arith.subf %59, %64 : vector<16x64xf32>
    %66 = arith.mulf %65, %65 : vector<16x64xf32>
    %cst_28 = arith.constant dense<0.000000e+00> : vector<16xf32>
    %67 = vector.multi_reduction <add>, %66, %cst_28 [1] : vector<16x64xf32> to vector<16xf32>
    %68 = vector.shape_cast %67 : vector<16xf32> to vector<16x1xf32>
    %cst_29 = arith.constant 6.400000e+01 : f32
    %69 = vector.broadcast %cst_29 : f32 to vector<16x1xf32>
    %70 = arith.divf %68, %69 : vector<16x1xf32>
    %71 = vector.broadcast %63 : vector<16x1xf32> to vector<16x64xf32>
    %72 = arith.subf %59, %71 : vector<16x64xf32>
    %cst_30 = arith.constant 9.99999974E-6 : f32
    %73 = vector.broadcast %cst_30 : f32 to vector<16x1xf32>
    %74 = arith.addf %70, %73 : vector<16x1xf32>
    %75 = math.rsqrt %74 : vector<16x1xf32>
    %76 = vector.broadcast %75 : vector<16x1xf32> to vector<16x64xf32>
    %77 = arith.mulf %72, %76 : vector<16x64xf32>
    %c0_31 = arith.constant 0 : index
    %c0_32 = arith.constant 0 : index
    %c0_33 = arith.constant 0 : index
    %78 = vector.load %arg10[%c0_31, %c0_32, %c0_33] : memref<1x1x64xf32, #tpu.memory_space<vmem>>, vector<1x1x64xf32>
    %79 = vector.shape_cast %78 : vector<1x1x64xf32> to vector<1x64xf32>
    %80 = vector.broadcast %79 : vector<1x64xf32> to vector<16x64xf32>
    %81 = arith.mulf %77, %80 : vector<16x64xf32>
    %c0_34 = arith.constant 0 : index
    %c0_35 = arith.constant 0 : index
    %c0_36 = arith.constant 0 : index
    %82 = vector.load %arg11[%c0_34, %c0_35, %c0_36] : memref<1x1x64xf32, #tpu.memory_space<vmem>>, vector<1x1x64xf32>
    %83 = vector.shape_cast %82 : vector<1x1x64xf32> to vector<1x64xf32>
    %84 = vector.broadcast %83 : vector<1x64xf32> to vector<16x64xf32>
    %85 = arith.addf %81, %84 : vector<16x64xf32>
    %c0_37 = arith.constant 0 : index
    %c0_38 = arith.constant 0 : index
    %c0_39 = arith.constant 0 : index
    %86 = vector.load %arg12[%c0_37, %c0_38, %c0_39] : memref<1x64x256xf32, #tpu.memory_space<vmem>>, vector<1x64x256xf32>
    %87 = vector.shape_cast %86 : vector<1x64x256xf32> to vector<64x256xf32>
    %cst_40 = arith.constant dense<0.000000e+00> : vector<16x256xf32>
    %88 = tpu.matmul %85, %87, %cst_40 {dimension_numbers = #tpu.dot_dimension_numbers<[1], [0], [0], [1], [0, 0, 1, 1], [], []>} : vector<16x64xf32>, vector<64x256xf32>, vector<16x256xf32> -> vector<16x256xf32>
    %c0_41 = arith.constant 0 : index
    %c0_42 = arith.constant 0 : index
    %c0_43 = arith.constant 0 : index
    %89 = vector.load %arg13[%c0_41, %c0_42, %c0_43] : memref<1x1x256xf32, #tpu.memory_space<vmem>>, vector<1x1x256xf32>
    %90 = vector.shape_cast %89 : vector<1x1x256xf32> to vector<1x256xf32>
    %91 = vector.broadcast %90 : vector<1x256xf32> to vector<16x256xf32>
    %92 = arith.addf %88, %91 : vector<16x256xf32>
    %cst_44 = arith.constant 0.000000e+00 : f32
    %93 = vector.broadcast %cst_44 : f32 to vector<16x256xf32>
    %94 = arith.maximumf %92, %93 : vector<16x256xf32>
    %c0_45 = arith.constant 0 : index
    %c0_46 = arith.constant 0 : index
    %c0_47 = arith.constant 0 : index
    %95 = vector.load %arg14[%c0_45, %c0_46, %c0_47] : memref<1x256x64xf32, #tpu.memory_space<vmem>>, vector<1x256x64xf32>
    %96 = vector.shape_cast %95 : vector<1x256x64xf32> to vector<256x64xf32>
    %cst_48 = arith.constant dense<0.000000e+00> : vector<16x64xf32>
    %97 = tpu.matmul %94, %96, %cst_48 {dimension_numbers = #tpu.dot_dimension_numbers<[1], [0], [0], [1], [0, 0, 1, 1], [], []>} : vector<16x256xf32>, vector<256x64xf32>, vector<16x64xf32> -> vector<16x64xf32>
    %c0_49 = arith.constant 0 : index
    %c0_50 = arith.constant 0 : index
    %c0_51 = arith.constant 0 : index
    %98 = vector.load %arg15[%c0_49, %c0_50, %c0_51] : memref<1x1x64xf32, #tpu.memory_space<vmem>>, vector<1x1x64xf32>
    %99 = vector.shape_cast %98 : vector<1x1x64xf32> to vector<1x64xf32>
    %100 = vector.broadcast %99 : vector<1x64xf32> to vector<16x64xf32>
    %101 = arith.addf %97, %100 : vector<16x64xf32>
    %102 = arith.addf %85, %101 : vector<16x64xf32>
    %cst_52 = arith.constant dense<0.000000e+00> : vector<16xf32>
    %103 = vector.multi_reduction <add>, %102, %cst_52 [1] : vector<16x64xf32> to vector<16xf32>
    %104 = vector.shape_cast %103 : vector<16xf32> to vector<16x1xf32>
    %cst_53 = arith.constant 6.400000e+01 : f32
    %105 = vector.broadcast %cst_53 : f32 to vector<16x1xf32>
    %106 = arith.divf %104, %105 : vector<16x1xf32>
    %107 = vector.broadcast %106 : vector<16x1xf32> to vector<16x64xf32>
    %108 = arith.subf %102, %107 : vector<16x64xf32>
    %109 = arith.mulf %108, %108 : vector<16x64xf32>
    %cst_54 = arith.constant dense<0.000000e+00> : vector<16xf32>
    %110 = vector.multi_reduction <add>, %109, %cst_54 [1] : vector<16x64xf32> to vector<16xf32>
    %111 = vector.shape_cast %110 : vector<16xf32> to vector<16x1xf32>
    %cst_55 = arith.constant 6.400000e+01 : f32
    %112 = vector.broadcast %cst_55 : f32 to vector<16x1xf32>
    %113 = arith.divf %111, %112 : vector<16x1xf32>
    %114 = vector.broadcast %106 : vector<16x1xf32> to vector<16x64xf32>
    %115 = arith.subf %102, %114 : vector<16x64xf32>
    %cst_56 = arith.constant 9.99999974E-6 : f32
    %116 = vector.broadcast %cst_56 : f32 to vector<16x1xf32>
    %117 = arith.addf %113, %116 : vector<16x1xf32>
    %118 = math.rsqrt %117 : vector<16x1xf32>
    %119 = vector.broadcast %118 : vector<16x1xf32> to vector<16x64xf32>
    %120 = arith.mulf %115, %119 : vector<16x64xf32>
    %c0_57 = arith.constant 0 : index
    %c0_58 = arith.constant 0 : index
    %c0_59 = arith.constant 0 : index
    %121 = vector.load %arg16[%c0_57, %c0_58, %c0_59] : memref<1x1x64xf32, #tpu.memory_space<vmem>>, vector<1x1x64xf32>
    %122 = vector.shape_cast %121 : vector<1x1x64xf32> to vector<1x64xf32>
    %123 = vector.broadcast %122 : vector<1x64xf32> to vector<16x64xf32>
    %124 = arith.mulf %120, %123 : vector<16x64xf32>
    %c0_60 = arith.constant 0 : index
    %c0_61 = arith.constant 0 : index
    %c0_62 = arith.constant 0 : index
    %125 = vector.load %arg17[%c0_60, %c0_61, %c0_62] : memref<1x1x64xf32, #tpu.memory_space<vmem>>, vector<1x1x64xf32>
    %126 = vector.shape_cast %125 : vector<1x1x64xf32> to vector<1x64xf32>
    %127 = vector.broadcast %126 : vector<1x64xf32> to vector<16x64xf32>
    %128 = arith.addf %124, %127 : vector<16x64xf32>
    %129 = vector.shape_cast %128 : vector<16x64xf32> to vector<2x8x64xf32>
    %c0_63 = arith.constant 0 : index
    %c0_64 = arith.constant 0 : index
    %c0_65 = arith.constant 0 : index
    %130 = vector.load %arg23[%c0_63, %c0_64, %c0_65] : memref<2x8x64xf32, #tpu.memory_space<vmem>>, vector<2x8x64xf32>
    tpu.vector_store %arg23[%c0_63, %c0_64, %c0_65], %129 {strides = array<i32>} : memref<2x8x64xf32, #tpu.memory_space<vmem>>, vector<2x8x64xf32>,
    %c5_i32 = arith.constant 5 : i32
    %131 = arith.cmpi eq, %arg1, %c5_i32 : i32
    %132 = arith.extui %131 : i1 to i32
    %c0_i32_66 = arith.constant 0 : i32
    %133 = arith.cmpi ne, %132, %c0_i32_66 : i32
    scf.if %133 {
      %cst_67 = arith.constant dense<0.000000e+00> : vector<16xf32>
      %134 = vector.multi_reduction <add>, %128, %cst_67 [1] : vector<16x64xf32> to vector<16xf32>
      %135 = vector.shape_cast %134 : vector<16xf32> to vector<16x1xf32>
      %cst_68 = arith.constant 6.400000e+01 : f32
      %136 = vector.broadcast %cst_68 : f32 to vector<16x1xf32>
      %137 = arith.divf %135, %136 : vector<16x1xf32>
      %138 = vector.broadcast %137 : vector<16x1xf32> to vector<16x64xf32>
      %139 = arith.subf %128, %138 : vector<16x64xf32>
      %140 = arith.mulf %139, %139 : vector<16x64xf32>
      %cst_69 = arith.constant dense<0.000000e+00> : vector<16xf32>
      %141 = vector.multi_reduction <add>, %140, %cst_69 [1] : vector<16x64xf32> to vector<16xf32>
      %142 = vector.shape_cast %141 : vector<16xf32> to vector<16x1xf32>
      %cst_70 = arith.constant 6.400000e+01 : f32
      %143 = vector.broadcast %cst_70 : f32 to vector<16x1xf32>
      %144 = arith.divf %142, %143 : vector<16x1xf32>
      %145 = vector.broadcast %137 : vector<16x1xf32> to vector<16x64xf32>
      %146 = arith.subf %128, %145 : vector<16x64xf32>
      %cst_71 = arith.constant 9.99999974E-6 : f32
      %147 = vector.broadcast %cst_71 : f32 to vector<16x1xf32>
      %148 = arith.addf %144, %147 : vector<16x1xf32>
      %149 = math.rsqrt %148 : vector<16x1xf32>
      %150 = vector.broadcast %149 : vector<16x1xf32> to vector<16x64xf32>
      %151 = arith.mulf %146, %150 : vector<16x64xf32>
      %c0_72 = arith.constant 0 : index
      %c0_73 = arith.constant 0 : index
      %152 = vector.load %arg18[%c0_72, %c0_73] : memref<1x64xf32, #tpu.memory_space<vmem>>, vector<1x64xf32>
      %153 = vector.broadcast %152 : vector<1x64xf32> to vector<16x64xf32>
      %154 = arith.mulf %151, %153 : vector<16x64xf32>
      %c0_74 = arith.constant 0 : index
      %c0_75 = arith.constant 0 : index
      %155 = vector.load %arg19[%c0_74, %c0_75] : memref<1x64xf32, #tpu.memory_space<vmem>>, vector<1x64xf32>
      %156 = vector.broadcast %155 : vector<1x64xf32> to vector<16x64xf32>
      %157 = arith.addf %154, %156 : vector<16x64xf32>
      %c0_76 = arith.constant 0 : index
      %c0_77 = arith.constant 0 : index
      %158 = vector.load %arg20[%c0_76, %c0_77] : memref<64x16xf32, #tpu.memory_space<vmem>>, vector<64x16xf32>
      %cst_78 = arith.constant dense<0.000000e+00> : vector<16x16xf32>
      %159 = tpu.matmul %157, %158, %cst_78 {dimension_numbers = #tpu.dot_dimension_numbers<[1], [0], [0], [1], [0, 0, 1, 1], [], []>} : vector<16x64xf32>, vector<64x16xf32>, vector<16x16xf32> -> vector<16x16xf32>
      %c0_79 = arith.constant 0 : index
      %c0_80 = arith.constant 0 : index
      %160 = vector.load %arg21[%c0_79, %c0_80] : memref<1x16xf32, #tpu.memory_space<vmem>>, vector<1x16xf32>
      %161 = vector.broadcast %160 : vector<1x16xf32> to vector<16x16xf32>
      %162 = arith.addf %159, %161 : vector<16x16xf32>
      %163 = vector.shape_cast %162 : vector<16x16xf32> to vector<2x8x16xf32>
      %c0_81 = arith.constant 0 : index
      %c0_82 = arith.constant 0 : index
      %c0_83 = arith.constant 0 : index
      %164 = vector.load %arg22[%c0_81, %c0_82, %c0_83] : memref<2x8x16xf32, #tpu.memory_space<vmem>>, vector<2x8x16xf32>
      tpu.vector_store %arg22[%c0_81, %c0_82, %c0_83], %163 {strides = array<i32>} : memref<2x8x16xf32, #tpu.memory_space<vmem>>, vector<2x8x16xf32>,
    } else {
    }
    return
  }
  func.func @transform_0(%arg0: i32, %arg1: i32) -> (i32, i32, i32) {
    %c0_i32 = arith.constant 0 : i32
    %c0_i32_0 = arith.constant 0 : i32
    %c0_i32_1 = arith.constant 0 : i32
    return %arg0, %c0_i32, %c0_i32_0 : i32, i32, i32
  }
  func.func @transform_1(%arg0: i32, %arg1: i32) -> (i32, i32) {
    %c0_i32 = arith.constant 0 : i32
    %c0_i32_0 = arith.constant 0 : i32
    %c0_i32_1 = arith.constant 0 : i32
    return %c0_i32, %c0_i32_0 : i32, i32
  }
  func.func @transform_2(%arg0: i32, %arg1: i32) -> (i32, i32) {
    %c0_i32 = arith.constant 0 : i32
    %c0_i32_0 = arith.constant 0 : i32
    %c0_i32_1 = arith.constant 0 : i32
    return %c0_i32, %c0_i32_0 : i32, i32
  }
  func.func @transform_3(%arg0: i32, %arg1: i32) -> (i32, i32) {
    %c0_i32 = arith.constant 0 : i32
    %c0_i32_0 = arith.constant 0 : i32
    %c0_i32_1 = arith.constant 0 : i32
    return %c0_i32, %c0_i32_0 : i32, i32
  }
  func.func @transform_4(%arg0: i32, %arg1: i32) -> (i32, i32, i32) {
    %c0_i32 = arith.constant 0 : i32
    %c0_i32_0 = arith.constant 0 : i32
    %c0_i32_1 = arith.constant 0 : i32
    return %arg1, %c0_i32, %c0_i32_0 : i32, i32, i32
  }
  func.func @transform_5(%arg0: i32, %arg1: i32) -> (i32, i32, i32) {
    %c0_i32 = arith.constant 0 : i32
    %c0_i32_0 = arith.constant 0 : i32
    %c0_i32_1 = arith.constant 0 : i32
    return %arg1, %c0_i32, %c0_i32_0 : i32, i32, i32
  }
  func.func @transform_6(%arg0: i32, %arg1: i32) -> (i32, i32, i32) {
    %c0_i32 = arith.constant 0 : i32
    %c0_i32_0 = arith.constant 0 : i32
    %c0_i32_1 = arith.constant 0 : i32
    return %arg1, %c0_i32, %c0_i32_0 : i32, i32, i32
  }
  func.func @transform_7(%arg0: i32, %arg1: i32) -> (i32, i32, i32) {
    %c0_i32 = arith.constant 0 : i32
    %c0_i32_0 = arith.constant 0 : i32
    %c0_i32_1 = arith.constant 0 : i32
    return %arg1, %c0_i32, %c0_i32_0 : i32, i32, i32
  }
  func.func @transform_8(%arg0: i32, %arg1: i32) -> (i32, i32, i32) {
    %c0_i32 = arith.constant 0 : i32
    %c0_i32_0 = arith.constant 0 : i32
    %c0_i32_1 = arith.constant 0 : i32
    return %arg1, %c0_i32, %c0_i32_0 : i32, i32, i32
  }
  func.func @transform_9(%arg0: i32, %arg1: i32) -> (i32, i32, i32) {
    %c0_i32 = arith.constant 0 : i32
    %c0_i32_0 = arith.constant 0 : i32
    %c0_i32_1 = arith.constant 0 : i32
    return %arg1, %c0_i32, %c0_i32_0 : i32, i32, i32
  }
  func.func @transform_10(%arg0: i32, %arg1: i32) -> (i32, i32, i32) {
    %c0_i32 = arith.constant 0 : i32
    %c0_i32_0 = arith.constant 0 : i32
    %c0_i32_1 = arith.constant 0 : i32
    return %arg1, %c0_i32, %c0_i32_0 : i32, i32, i32
  }
  func.func @transform_11(%arg0: i32, %arg1: i32) -> (i32, i32, i32) {
    %c0_i32 = arith.constant 0 : i32
    %c0_i32_0 = arith.constant 0 : i32
    %c0_i32_1 = arith.constant 0 : i32
    return %arg1, %c0_i32, %c0_i32_0 : i32, i32, i32
  }
  func.func @transform_12(%arg0: i32, %arg1: i32) -> (i32, i32, i32) {
    %c0_i32 = arith.constant 0 : i32
    %c0_i32_0 = arith.constant 0 : i32
    %c0_i32_1 = arith.constant 0 : i32
    return %arg1, %c0_i32, %c0_i32_0 : i32, i32, i32
  }
  func.func @transform_13(%arg0: i32, %arg1: i32) -> (i32, i32, i32) {
    %c0_i32 = arith.constant 0 : i32
    %c0_i32_0 = arith.constant 0 : i32
    %c0_i32_1 = arith.constant 0 : i32
    return %arg1, %c0_i32, %c0_i32_0 : i32, i32, i32
  }
  func.func @transform_14(%arg0: i32, %arg1: i32) -> (i32, i32, i32) {
    %c0_i32 = arith.constant 0 : i32
    %c0_i32_0 = arith.constant 0 : i32
    %c0_i32_1 = arith.constant 0 : i32
    return %arg1, %c0_i32, %c0_i32_0 : i32, i32, i32
  }
  func.func @transform_15(%arg0: i32, %arg1: i32) -> (i32, i32, i32) {
    %c0_i32 = arith.constant 0 : i32
    %c0_i32_0 = arith.constant 0 : i32
    %c0_i32_1 = arith.constant 0 : i32
    return %arg1, %c0_i32, %c0_i32_0 : i32, i32, i32
  }
  func.func @transform_16(%arg0: i32, %arg1: i32) -> (i32, i32) {
    %c0_i32 = arith.constant 0 : i32
    %c0_i32_0 = arith.constant 0 : i32
    %c0_i32_1 = arith.constant 0 : i32
    return %c0_i32, %c0_i32_0 : i32, i32
  }
  func.func @transform_17(%arg0: i32, %arg1: i32) -> (i32, i32) {
    %c0_i32 = arith.constant 0 : i32
    %c0_i32_0 = arith.constant 0 : i32
    %c0_i32_1 = arith.constant 0 : i32
    return %c0_i32, %c0_i32_0 : i32, i32
  }
  func.func @transform_18(%arg0: i32, %arg1: i32) -> (i32, i32) {
    %c0_i32 = arith.constant 0 : i32
    %c0_i32_0 = arith.constant 0 : i32
    %c0_i32_1 = arith.constant 0 : i32
    return %c0_i32, %c0_i32_0 : i32, i32
  }
  func.func @transform_19(%arg0: i32, %arg1: i32) -> (i32, i32) {
    %c0_i32 = arith.constant 0 : i32
    %c0_i32_0 = arith.constant 0 : i32
    %c0_i32_1 = arith.constant 0 : i32
    return %c0_i32, %c0_i32_0 : i32, i32
  }
  func.func @transform_20(%arg0: i32, %arg1: i32) -> (i32, i32, i32) {
    %c0_i32 = arith.constant 0 : i32
    %c0_i32_0 = arith.constant 0 : i32
    %c0_i32_1 = arith.constant 0 : i32
    return %arg0, %c0_i32, %c0_i32_0 : i32, i32, i32
  }
}

</mosaic_0001>

<bundles_post_ra>
// kernel: tfae_forward.1
= control target key start
LH: loop header
LB: loop body
LE: loop exit
PB: predicated region body
PF: predicated region fallthrough
CT: control target
= control target key end

     0   :  { %s2589_s0 = inlined_call_operand.vmem [shape: f32[2,8,16], index: 0, kind: input, shape index: {}]   ;;  %s2590_s1 = inlined_call_operand.vmem [shape: f32[16,64], index: 1, kind: input, shape index: {}]   ;;  %s2591_s2 = inlined_call_operand.vmem [shape: f32[1,64], index: 2, kind: input, shape index: {}]   ;;  %s2592_s3 = inlined_call_operand.vmem [shape: f32[8,64], index: 3, kind: input, shape index: {}]   ;;  %s2593_s4 = inlined_call_operand.vmem [shape: f32[6,64,192], index: 4, kind: input, shape index: {}]   ;;  %s2594_s5 = inlined_call_operand.vmem [shape: f32[6,1,192], index: 5, kind: input, shape index: {}]   ;;  %s2595_s6 = inlined_call_operand.vmem [shape: f32[6,64,64], index: 6, kind: input, shape index: {}]   ;;  %s2596_s7 = inlined_call_operand.vmem [shape: f32[6,1,64], index: 7, kind: input, shape index: {}]   ;;  %s2597_s8 = inlined_call_operand.vmem [shape: f32[6,1,64], index: 8, kind: input, shape index: {}]   ;;  %s2598_s9 = inlined_call_operand.vmem [shape: f32[6,1,64], index: 9, kind: input, shape index: {}]   ;;  %s2599_s10 = inlined_call_operand.vmem [shape: f32[6,64,256], index: 10, kind: input, shape index: {}]   ;;  %s2600_s11 = inlined_call_operand.vmem [shape: f32[6,1,256], index: 11, kind: input, shape index: {}]   ;;  %s2601_s12 = inlined_call_operand.vmem [shape: f32[6,256,64], index: 12, kind: input, shape index: {}]   ;;  %s2602_s13 = inlined_call_operand.vmem [shape: f32[6,1,64], index: 13, kind: input, shape index: {}]   ;;  %s2603_s14 = inlined_call_operand.vmem [shape: f32[6,1,64], index: 14, kind: input, shape index: {}]   ;;  %s2604_s15 = inlined_call_operand.vmem [shape: f32[6,1,64], index: 15, kind: input, shape index: {}]   ;;  %s2605_s16 = inlined_call_operand.vmem [shape: f32[1,64], index: 16, kind: input, shape index: {}]   ;;  %s2606_s17 = inlined_call_operand.vmem [shape: f32[1,64], index: 17, kind: input, shape index: {}]   ;;  %s2607_s18 = inlined_call_operand.vmem [shape: f32[64,16], index: 18, kind: input, shape index: {}]   ;;  %s2608_s19 = inlined_call_operand.vmem [shape: f32[1,16], index: 19, kind: input, shape index: {}]   ;;  %s2609_s20 = inlined_call_operand.hbm [shape: f32[2,8,16], index: 20, kind: output, shape index: {}]  }
   0x1   :  { %2615 = sst [smem:[#allocation10_spill]] %s2589_s0 }
   0x2   :  { %2616 = sst [smem:[#allocation11_spill]] %s2590_s1 }
   0x3   :  { %2617 = sst [smem:[#allocation12_spill]] %s2591_s2 }
   0x4   :  { %2618 = sst [smem:[#allocation13_spill]] %s2592_s3 }
   0x5   :  { %2619 = sst [smem:[#allocation14_spill]] %s2593_s4 }
   0x6   :  { %2620 = sst [smem:[#allocation15_spill]] %s2594_s5 }
   0x7   :  { %2621 = sst [smem:[#allocation16_spill]] %s2595_s6 }
   0x8   :  { %2622 = sst [smem:[#allocation17_spill]] %s2605_s16 }
   0x9   :  { %2623 = sst [smem:[#allocation18_spill]] %s2606_s17 }
   0xa   :  { %2624 = sst [smem:[#allocation19_spill]] %s2607_s18 }
   0xb   :  { %2625 = sst [smem:[#allocation20_spill]] %s2608_s19 }
   0xc   :  { %2626 = sst [smem:[#allocation21_spill]] %s2609_s20 }
   0xd   :  { %25 = vsyncpa [#allocation4], 0  ;;  %s2212_s1 = smov 0   ;;  %s2214_s22 = smov 0  }
   0xe   :  { %s2216_s23 = smov 0  }
   0xf LB: > { %2627 = sst [smem:[#allocation6_spill]] %s2094_s22  ;;  %s40_s2 = sadd.s32 1, %s2094_s22  ;;  %s2098_s23 = sphi %s2216_s23, %s31_s23   ;;  %s2094_s22 = sphi %s2214_s22, %s2652_s22   ;;  %s2090_s1 = sphi %s2212_s1, %s2651_s1  }
  0x10   : > { %2628 = sst [smem:[#allocation7_spill]] %s2098_s23  ;;  %p41_p0 = scmp.ge.s32.totalorder %s40_s2, 6 }
  0x11   : > { %p1910_p1 = scmp.ge.s32.totalorder %s2098_s23, 1  ;;  %p682_p2 = scmp.lt.s32.totalorder %s2098_s23, 7 }
  0x12   : > { %s2654_s2 = smov (%p41_p0, %s40_s2), 0 }
  0x13   : > { %2629 = sst [smem:[#allocation8_spill]] %s2654_s2  ;;  %p683_p3 = pnand %p1910_p1, %p682_p2 }
  0x15   : > { %686 = sbr.rel (%p683_p3) target bundleno = 2853 (0xb25), region = 100 }
  0x1a   : > { %p787_p4 = scmp.lt.s32.totalorder %s2090_s1, 5  ;;  %s2630_s4 = sld [smem:[#allocation14_spill]] }
  0x1b   : > { %s2631_s5 = sld [smem:[#allocation15_spill]]  ;;  %p1921_p5 = scmp.ne.s32.totalorder %s2090_s1, 0 }
  0x1c   : > { %s2235_s25 = scalar_select %p787_p4, %s2090_s1, 5 }
  0x1d   : > { %s2633_s6 = sld [smem:[#allocation16_spill]] }
  0x1e   : > { %s1953_s3 = sshll.u32 %s2235_s25, 7  ;;  %s1913_s26 = sshll.u32 %s2235_s25, 1 }
  0x1f   : > { %s1954_s24 = sshll.u32 %s2235_s25, 6  ;;  %s2275_s20 = scalar_lea.vmem %s2600_s11, %s1913_s26 }
  0x20   : > { %s2242_s29 = scalar_lea.vmem %s2630_s4, %s1953_s3  ;;  %s1956_s19 = sshll.u32 %s2235_s25, 8 }
  0x21   : > { %s2247_s21 = scalar_lea.vmem %s2631_s5, %s1913_s26  ;;  %s2281_s16 = scalar_lea.vmem %s2601_s12, %s1956_s19 }
  0x22   : > { %2632 = sst [smem:[#allocation9_spill]] %s2247_s21  ;;  %s2270_s21 = scalar_lea.vmem %s2599_s10, %s1953_s3 }
  0x23   : > { %s2257_s17 = scalar_lea.vmem %s2633_s6, %s1954_s24  ;;  %s826_s28 = scalar_lea.vmem %s2602_s13, %s2235_s25 }
  0x24   : > { %s829_s5 = scalar_lea.vmem %s2603_s14, %s2235_s25  ;;  %s832_s22 = scalar_lea.vmem %s2604_s15, %s2235_s25 }
  0x25   : > { %837 = sbr.rel (%p1921_p5) target bundleno = 179 (0xb3), region = 104  ;;  %s2634_s23 = sld [smem:[#allocation11_spill]] (!%p1921_p5) }
  0x26   : > { %s2636_s18 = sld [smem:[#allocation10_spill]] (!%p1921_p5) }
  0x27   : > { %s2637_s2 = sld [smem:[#allocation12_spill]] (!%p1921_p5) }
  0x28   : > { %s2638_s19 = sld [smem:[#allocation13_spill]] (!%p1921_p5) }
  0x2a   : > { %vm842_vm0 = vcmask 130048   ;;  %vm881_vm1 = vcmask 523264  }
  0x2b   : > { %s2635_s24 = smov %s2634_s23  ;;  %v841_v0 = vld [vmem:[%s2634_s23 + $0x8] sm:$0xff] }
  0x2c   : > { %v840_v1 = vld [vmem:[%s2635_s24] sm:$0xff]  ;;  %863 = vmatpush.msra.mxu0 %v841_v0  ;;  %1957 = vmatpush.msra.mxu1 %v841_v0  ;;  %v839_v3 = vld [vmem:[%s2636_s18 + $0x8] sm:$0xff] }
  0x2d   : > { %v838_v2 = vld [vmem:[%s2636_s18] sm:$0xff] }
  0x2e   : > { %864 = vmatpush.msra.mxu0 %v840_v1  ;;  %1958 = vmatpush.msra.mxu1 %v840_v1  ;;  %v2004_v4 = vld [vmem:[%s2637_s2] ss:$0 sm:$0xff] }
  0x2f   : > { %1922 = vmatmul.msk.f32.vlgmr.msra.gmra.mxu0 %vm842_vm0, %v838_v2  ;;  %1923 = vmatmul.msk.f32.vlgmr.msra.gmra.mxu1 %vm842_vm0, %v839_v3  ;;  %v878_v6 = vld [vmem:[%s2638_s19] sm:$0xff] }
  0xac   : > { %v866_v5 = vpop.f32.mrf.mxu0  ;;  %v869_v7 = vpop.f32.mrf.mxu1 }
  0xad   : > { %v876_v8 = vadd.f32 %v2004_v4, %v866_v5  ;;  %v877_v9 = vadd.f32 %v2004_v4, %v869_v7 }
  0xaf   : > { %v879_v10 = vadd.f32 %v878_v6, %v876_v8  ;;  %v880_v11 = vadd.f32 %v878_v6, %v877_v9 }
  0xb1   : > { %882 = vst.msk [vmem:[#allocation2] sm:$0xff] %vm881_vm1, %v879_v10 }
  0xb2   : > { %883 = vst.msk [vmem:[#allocation2 + $0x8] sm:$0xff] %vm881_vm1, %v880_v11 }
  0xb3 PF: > { %v900_v12 = vld [vmem:[%s2242_s29 + $0x70] sm:$0xff]  ;;  %v898_v13 = vld [vmem:[%s2242_s29 + $0x60] sm:$0xff]  ;;  %vm908_vm2 = vcmask 523264   ;;  %v901_v21 = vld [vmem:[%s2242_s29 + $0x78] sm:$0xff]  ;;  %s2639_s27 = sld [smem:[#allocation9_spill]]  ;;  %s2100_s30 = smov 32  }
  0xb4   : > { %923 = vmatpush.msra.mxu1 %v900_v12  ;;  %v896_v14 = vld [vmem:[%s2242_s29 + $0x50] sm:$0xff]  ;;  %v894_v15 = vld [vmem:[%s2242_s29 + $0x40] sm:$0xff]  ;;  %v899_v22 = vld [vmem:[%s2242_s29 + $0x68] sm:$0xff]  ;;  %s2101_s4 = smov 64   ;;  %vm964_vm3 = vcmask 261120   ;;  %vm1018_vm4 = vcmask 64512   ;;  %s2640_s26 = scalar_lea.vmem %s2596_s7, %s2235_s25 }
  0xb5   : > { %v892_v16 = vld [vmem:[%s2242_s29 + $0x30] sm:$0xff]  ;;  %v890_v17 = vld [vmem:[%s2242_s29 + $0x20] sm:$0xff]  ;;  %v897_v23 = vld [vmem:[%s2242_s29 + $0x58] sm:$0xff]  ;;  %s2641_s2 = scalar_lea.vmem %s2597_s8, %s2235_s25  ;;  %s2642_s19 = scalar_lea.vmem %s2598_s9, %s2235_s25 }
  0xb6   : > { %924 = vmatpush.msra.mxu1 %v898_v13  ;;  %v888_v18 = vld [vmem:[%s2242_s29 + $0x10] sm:$0xff]  ;;  %v886_v19 = vld [vmem:[%s2242_s29] sm:$0xff]  ;;  %v895_v24 = vld [vmem:[%s2242_s29 + $0x48] sm:$0xff]  ;;  %p1946_p6 = scmp.ne.s32.totalorder %s2090_s1, 5 }
  0xb7   : > { %v893_v26 = vld [vmem:[%s2242_s29 + $0x38] sm:$0xff]  ;;  %v891_v27 = vld [vmem:[%s2242_s29 + $0x28] sm:$0xff]  ;;  %s2646_s0 = sld [smem:[#allocation20_spill]] (!%p1946_p6) }
  0xb8   : > { %925 = vmatpush.msra.mxu1 %v896_v14  ;;  %v2322_v20 = vld [vmem:[#allocation2] sm:$0xff]  ;;  %v889_v28 = vld [vmem:[%s2242_s29 + $0x18] sm:$0xff]  ;;  %v887_v29 = vld [vmem:[%s2242_s29 + $0x8] sm:$0xff]  ;;  %s2102_s29 = smov 96  }
  0xb9   : > { %v2330_v25 = vld [vmem:[#allocation2 + $0x8] sm:$0xff]  ;;  %v902_v30 = vld [vmem:[%s2639_s27] sm:$0x3] }
  0xba   : > { %926 = vmatpush.msra.mxu1 %v894_v15  ;;  %v904_v31 = vperm.slane %v902_v30, 0  ;;  %v905_v36 = vperm.slane %v902_v30, 1 }
  0xbc   : > { %927 = vmatpush.msra.mxu1 %v892_v16 }
  0xbe   : > { %928 = vmatpush.msra.mxu1 %v890_v17 }
  0xc0   : > { %929 = vmatpush.msra.mxu1 %v888_v18 }
  0xc2   : > { %930 = vmatpush.msra.mxu1 %v886_v19 }
  0xc3   : > { %1924 = vmatmul.msk.f32.vlgmr.msra.gmra.mxu1 %vm908_vm2, %v2322_v20 }
  0xc4   : > { %946 = vmatpush.msrb.mxu1 %v901_v21 }
  0xc6   : > { %947 = vmatpush.msrb.mxu1 %v899_v22 }
  0xc8   : > { %948 = vmatpush.msrb.mxu1 %v897_v23 }
  0xca   : > { %949 = vmatpush.msrb.mxu1 %v895_v24 }
  0xcb   : > { %1925 = vmatmul.msk.f32.gmra.mxu1 %vm908_vm2, %v2330_v25 }
  0xcc   : > { %950 = vmatpush.msrb.mxu1 %v893_v26 }
  0xce   : > { %951 = vmatpush.msrb.mxu1 %v891_v27 }
  0xd0   : > { %952 = vmatpush.msrb.mxu1 %v889_v28 }
  0xd2   : > { %953 = vmatpush.msrb.mxu1 %v887_v29 }
  0xd3   : > { %1926 = vmatmul.msk.f32.vlgmr.msrb.gmra.mxu1 %vm908_vm2, %v2322_v20 }
  0xdb   : > { %1927 = vmatmul.msk.f32.gmra.mxu1 %vm908_vm2, %v2330_v25 }
 0x140   : > { %v932_v32 = vpop.f32.mrf.mxu1 }
 0x141   : > { %v933_v33 = vadd.f32 %v932_v32, %v904_v31 }
 0x143   : > { %1115 = vrot.lane.b32.xlu2 %v933_v33, %s2100_s30  ;;  %962 = vrot.lane.b32.xlu0 %v933_v33, %s2101_s4 }
 0x148   : > { %v935_v34 = vpop.f32.mrf.mxu1 }
 0x149   : > { %v936_v35 = vadd.f32 %v935_v34, %v904_v31 }
 0x14b   : > { %1113 = vrot.lane.b32.xlu2 %v933_v33, %s2102_s29  ;;  %990 = vrot.lane.b32.xlu0 %v936_v35, %s2101_s4  ;;  %s2644_s4 = sld [smem:[#allocation17_spill]] (!%p1946_p6) }
 0x150   : > { %v955_v37 = vpop.f32.mrf.mxu1 }
 0x151   : > { %v2346_v38 = vadd.f32 %v955_v37, %v905_v36 }
 0x153   : > { %1143 = vrot.lane.b32.xlu0 %v936_v35, %s2100_s30  ;;  %1085 = vmatpush.msra.mxu0 %v2346_v38 }
 0x158   : > { %v958_v39 = vpop.f32.mrf.mxu1 }
 0x159   : > { %v2349_v40 = vadd.f32 %v958_v39, %v905_v36 }
 0x15b   : > { %1108 = vmatpush.msra.mxu3 %v2349_v40 }
 0x19d   : > { %v1116_v43 = vpop.permute.xlu2 %1115 }
 0x1a5   : > { %v1114_v45 = vpop.permute.xlu2 %1113 }
 0x1b5   : > { %v963_v41 = vpop.permute.xlu0 %962 }
 0x1b6   : > { %1928 = vmatpush.xpose.msk.msra.mxu2 %vm964_vm3, %v963_v41 }
 0x1b9   : > { %1929 = vmatmul.msk.f32.vlgmr.msra.gmra.mxu2 %vm964_vm3, %v933_v33 }
 0x1bd   : > { %v991_v42 = vpop.permute.xlu0 %990 }
 0x1be   : > { %1930 = vmatpush.xpose.msk.msrb.mxu2 %vm964_vm3, %v991_v42 }
 0x1c1   : > { %1931 = vmatmul.msk.f32.vlgmr.msrb.gmra.mxu2 %vm964_vm3, %v936_v35 }
 0x1c2   : > { %1934 = vmatpush.xpose.msk.msra.mxu2 %vm964_vm3, %v1116_v43 }
 0x1c5   : > { %v1144_v44 = vpop.permute.xlu0 %1143 }
 0x1c6   : > { %1936 = vmatpush.xpose.msk.msrb.mxu3 %vm964_vm3, %v1144_v44 }
 0x1c9   : > { %1935 = vmatmul.msk.f32.vlgmr.msra.gmra.mxu2 %vm964_vm3, %v1114_v45 }
 0x23c   : > { %v986_v46 = vpop.f32.mrf.mxu2 }
 0x23d   : > { %v1016_v63 = vmul.f32 0.17677669, %v986_v46 }
 0x23f   : > { %v1019_v0 = vsel %vm1018_vm4, %v1016_v63, -inf }
 0x244   : > { %v1013_v47 = vpop.f32.mrf.mxu2 }
 0x245   : > { %v1017_v48 = vmul.f32 0.17677669, %v1013_v47 }
 0x247   : > { %v1022_v49 = vsel %vm1018_vm4, %v1017_v48, -inf }
 0x248   : > { %1023 = vmax.xlane.f32.xlu1 %v1022_v49 }
 0x24c   : > { %v1138_v50 = vpop.f32.mrf.mxu2 }
 0x24d   : > { %v1169_v51 = vmul.f32 0.17677669, %v1138_v50 }
 0x24f   : > { %v1171_v52 = vsel %vm1018_vm4, %v1169_v51, -inf }
 0x250   : > { %1172 = vmax.xlane.f32.xlu2 %v1171_v52 }
 0x2bb   : > { %v1024_v53 = vpop.xlane.xlu1 %1023 }
 0x2bc   : > { %v1026_v54 = vsub.f32 %v1017_v48, %v1024_v53 }
 0x2be   : > { %v1029_v55 = vmul.f32 1.442695, %v1026_v54 }
 0x2c0   : > { %2011 = vpow2.f32 %v1029_v55 }
 0x2c3   : > { %v1173_v56 = vpop.xlane.xlu2 %1172 }
 0x2c4   : > { %v1177_v57 = vsub.f32 %v1169_v51, %v1173_v56  ;;  %v1290_v56 = vld [vmem:[%s2257_s17 + $0x38] sm:$0xff] }
 0x2c5   : > { %1309 = vmatpush.msrb.mxu0 %v1290_v56  ;;  %v1390_v56 = vld [vmem:[%s2270_s21 + $0x8] sm:$0xff] }
 0x2c6   : > { %v2012_v58 = vpop.eup %2011  ;;  %v1179_v59 = vmul.f32 1.442695, %v1177_v57  ;;  %v1289_v57 = vld [vmem:[%s2257_s17 + $0x30] sm:$0xff] }
 0x2c7   : > { %v1034_v60 = vsel %vm1018_vm4, %v2012_v58, 0.0  ;;  %1310 = vmatpush.msrb.mxu0 %v1289_v57 }
 0x2c8   : > { %2013 = vpow2.f32 %v1179_v59  ;;  %1035 = vadd.xlane.f32.xlu1 %v1034_v60  ;;  %v1287_v59 = vld [vmem:[%s2257_s17 + $0x20] sm:$0xff]  ;;  %v1286_v60 = vld [vmem:[%s2257_s17 + $0x18] sm:$0xff] }
 0x2ce   : > { %v2362_v61 = vpop.eup %2013 }
 0x2cf   : > { %v1183_v62 = vsel %vm1018_vm4, %v2362_v61, 0.0 }
 0x2d0   : > { %1184 = vadd.xlane.f32.xlu2 %v1183_v62 }
 0x2e1   : > { %1141 = vrot.lane.b32.xlu1 %v936_v35, %s2102_s29 }
 0x30b   : > { %1020 = vmax.xlane.f32.xlu1 %v1019_v0 }
 0x33b   : > { %v1036_v1 = vpop.xlane.xlu1 %1035 }
 0x33c   : > { %2015 = vrcp.f32 %v1036_v1  ;;  %v1063_v5 = vand.u32 2147483648, %v1036_v1  ;;  %v1061_v7 = vand.u32 2147483647, %v1036_v1  ;;  %vm1057_vm6 = vweird.f32 %v1036_v1 }
 0x33e   : > { %v1064_v9 = vor.u32 1.1754944e-38, %v1063_v5  ;;  %vm1062_vm8 = vcmp.eq.f32.partialorder %v1061_v7, 8.507059e+37 }
 0x342   : > { %v2016_v2 = vpop.eup %2015 }
 0x343   : > { %v1053_v3 = vmul.f32 %v2016_v2, %v1036_v1  ;;  %vm1058_vm5 = vweird.f32 %v2016_v2  ;;  %v1185_v37 = vpop.xlane.xlu2 %1184 }
 0x344   : > { %vm1059_vm7 = vmor %vm1057_vm6, %vm1058_vm5  ;;  %v1200_v47 = vand.u32 2147483648, %v1185_v37  ;;  %vm1194_vm14 = vweird.f32 %v1185_v37  ;;  %v1198_v49 = vand.u32 2147483647, %v1185_v37 }
 0x345   : > { %v1054_v4 = vsub.f32 1.0, %v1053_v3 }
 0x346   : > { %v1201_v52 = vor.u32 1.1754944e-38, %v1200_v47  ;;  %vm1199_vm0 = vcmp.eq.f32.partialorder %v1198_v49, 8.507059e+37  ;;  %v1400_v47 = vld [vmem:[%s2270_s21 + $0x58] sm:$0xff]  ;;  %v1395_v49 = vld [vmem:[%s2270_s21 + $0x30] sm:$0xff] }
 0x347   : > { %v1055_v6 = vmul.f32 %v2016_v2, %v1054_v4 }
 0x349   : > { %v1056_v8 = vadd.f32 %v2016_v2, %v1055_v6 }
 0x34b   : > { %v1060_v10 = vsel %vm1059_vm7, %v2016_v2, %v1056_v8 }
 0x34c   : > { %v1065_v11 = vsel %vm1062_vm8, %v1064_v9, %v1060_v10 }
 0x34d   : > { %v1066_v12 = vmul.f32 %v2012_v58, %v1065_v11  ;;  %v1288_v58 = vld [vmem:[%s2257_s17 + $0x28] sm:$0xff] }
 0x34e   : > { %1311 = vmatpush.msrb.mxu0 %v1288_v58 }
 0x34f   : > { %1933 = vmatmul.msk.f32.vlgmr.msra.gmra.mxu3 %vm1018_vm4, %v1066_v12  ;;  %v1283_v12 = vld [vmem:[%s2257_s17] sm:$0xff] }
 0x350   : > { %1312 = vmatpush.msrb.mxu0 %v1287_v59 }
 0x352   : > { %1313 = vmatpush.msrb.mxu0 %v1286_v60 }
 0x353   : > { %v1142_v13 = vpop.permute.xlu1 %1141 }
 0x357   : > { %1937 = vmatmul.msk.f32.vlgmr.msrb.gmra.mxu3 %vm964_vm3, %v1142_v13 }
 0x37e   : > { %v1021_v14 = vpop.xlane.xlu1 %1020 }
 0x37f   : > { %v1025_v15 = vsub.f32 %v1016_v63, %v1021_v14  ;;  %v1285_v63 = vld [vmem:[%s2257_s17 + $0x10] sm:$0xff] }
 0x380   : > { %1314 = vmatpush.msrb.mxu0 %v1285_v63 }
 0x381   : > { %v1027_v16 = vmul.f32 1.442695, %v1025_v15 }
 0x383   : > { %2017 = vpow2.f32 %v1027_v16 }
 0x389   : > { %v2018_v17 = vpop.eup %2017 }
 0x38a   : > { %v1031_v18 = vsel %vm1018_vm4, %v2018_v17, 0.0 }
 0x38b   : > { %1032 = vadd.xlane.f32.xlu1 %v1031_v18 }
 0x3d2   : > { %v2371_v19 = vpop.f32.mrf.mxu3 }
 0x3da   : > { %v1166_v21 = vpop.f32.mrf.mxu3 }
 0x3db   : > { %v1170_v22 = vmul.f32 0.17677669, %v1166_v21 }
 0x3dd   : > { %v1174_v23 = vsel %vm1018_vm4, %v1170_v22, -inf }
 0x3de   : > { %1175 = vmax.xlane.f32.xlu0 %v1174_v23 }
 0x3f2   : > { %1220 = vrot.lane.b32.xlu0 %v2346_v38, %s2102_s29 }
 0x3fe   : > { %v1033_v24 = vpop.xlane.xlu1 %1032 }
 0x3ff   : > { %2019 = vrcp.f32 %v1033_v24  ;;  %v1048_v29 = vand.u32 2147483648, %v1033_v24  ;;  %v1046_v31 = vand.u32 2147483647, %v1033_v24  ;;  %vm1042_vm10 = vweird.f32 %v1033_v24 }
 0x400   : > { %2021 = vrcp.f32 %v1185_v37 }
 0x401   : > { %v1049_v33 = vor.u32 1.1754944e-38, %v1048_v29  ;;  %vm1047_vm12 = vcmp.eq.f32.partialorder %v1046_v31, 8.507059e+37 }
 0x405   : > { %v2020_v26 = vpop.eup %2019 }
 0x406   : > { %v1038_v27 = vmul.f32 %v2020_v26, %v1033_v24  ;;  %vm1043_vm9 = vweird.f32 %v2020_v26  ;;  %v2022_v38 = vpop.eup %2021 }
 0x407   : > { %vm1044_vm11 = vmor %vm1042_vm10, %vm1043_vm9  ;;  %v1190_v39 = vmul.f32 %v2022_v38, %v1185_v37  ;;  %vm1195_vm13 = vweird.f32 %v2022_v38 }
 0x408   : > { %v1039_v28 = vsub.f32 1.0, %v1038_v27  ;;  %vm1196_vm15 = vmor %vm1194_vm14, %vm1195_vm13  ;;  %v2103_v27 = vmov 64.0  }
 0x409   : > { %v1191_v42 = vsub.f32 1.0, %v1190_v39 }
 0x40a   : > { %v1040_v30 = vmul.f32 %v2020_v26, %v1039_v28 }
 0x40b   : > { %v1192_v45 = vmul.f32 %v2022_v38, %v1191_v42  ;;  %v1403_v42 = vld [vmem:[%s2270_s21 + $0x70] sm:$0xff] }
 0x40c   : > { %v1041_v32 = vadd.f32 %v2020_v26, %v1040_v30  ;;  %1425 = vmatpush.msra.mxu1 %v1403_v42  ;;  %v1467_v42 = vld [vmem:[%s2281_s16] sm:$0xff] }
 0x40d   : > { %v1193_v46 = vadd.f32 %v2022_v38, %v1192_v45  ;;  %v1402_v45 = vld [vmem:[%s2270_s21 + $0x68] sm:$0xff] }
 0x40e   : > { %v1045_v34 = vsel %vm1044_vm11, %v2020_v26, %v1041_v32 }
 0x40f   : > { %v1050_v35 = vsel %vm1047_vm12, %v1049_v33, %v1045_v34  ;;  %v1197_v51 = vsel %vm1196_vm15, %v2022_v38, %v1193_v46  ;;  %v1399_v46 = vld [vmem:[%s2270_s21 + $0x50] sm:$0xff] }
 0x410   : > { %v1051_v36 = vmul.f32 %v2018_v17, %v1050_v35  ;;  %v1202_v53 = vsel %vm1199_vm0, %v1201_v52, %v1197_v51  ;;  %v2005_v17 = vld [vmem:[%s2640_s26] ss:$0 sm:$0xff]  ;;  %v1394_v52 = vld [vmem:[%s2270_s21 + $0x28] sm:$0xff] }
 0x411   : > { %v1203_v55 = vmul.f32 %v2362_v61, %v1202_v53  ;;  %v1284_v61 = vld [vmem:[%s2257_s17 + $0x8] sm:$0xff]  ;;  %v1393_v51 = vld [vmem:[%s2270_s21 + $0x20] sm:$0xff]  ;;  %v1391_v53 = vld [vmem:[%s2270_s21 + $0x10] sm:$0xff] }
 0x412   : > { %1932 = vmatmul.msk.f32.vlgmr.msra.gmra.mxu0 %vm1018_vm4, %v1051_v36 }
 0x413   : > { %1315 = vmatpush.msrb.mxu0 %v1284_v61 }
 0x415   : > { %1316 = vmatpush.msrb.mxu0 %v1283_v12  ;;  %v1482_v12 = vld [vmem:[%s2281_s16 + $0x78] sm:$0xff] }
 0x451   : > { %v1176_v41 = vpop.xlane.xlu0 %1175 }
 0x452   : > { %v1178_v43 = vsub.f32 %v1170_v22, %v1176_v41 }
 0x454   : > { %v1181_v44 = vmul.f32 1.442695, %v1178_v43  ;;  %v1404_v43 = vld [vmem:[%s2270_s21 + $0x78] sm:$0xff] }
 0x456   : > { %2023 = vpow2.f32 %v1181_v44  ;;  %v1401_v44 = vld [vmem:[%s2270_s21 + $0x60] sm:$0xff] }
 0x457   : > { %1426 = vmatpush.msra.mxu1 %v1401_v44 }
 0x459   : > { %1427 = vmatpush.msra.mxu1 %v1399_v46 }
 0x45c   : > { %v2024_v48 = vpop.eup %2023 }
 0x45d   : > { %v1186_v50 = vsel %vm1018_vm4, %v2024_v48, 0.0 }
 0x45e   : > { %1187 = vadd.xlane.f32.xlu2 %v1186_v50  ;;  %v1396_v50 = vld [vmem:[%s2270_s21 + $0x38] sm:$0xff] }
 0x464   : > { %v1221_v54 = vpop.permute.xlu0 %1220 }
 0x465   : > { %1241 = vmatpush.msrb.mxu2 %v1221_v54  ;;  %v1392_v54 = vld [vmem:[%s2270_s21 + $0x18] sm:$0xff] }
 0x466   : > { %1938 = vmatmul.msk.f32.vlgmr.msrb.gmra.mxu2 %vm1018_vm4, %v1203_v55  ;;  %v1389_v55 = vld [vmem:[%s2270_s21] sm:$0xff] }
 0x467   : > { %1448 = vmatpush.msra.mxu2 %v1404_v43  ;;  %v1486_v43 = vld [vmem:[%s2281_s16 + $0x98] sm:$0xff] }
 0x469   : > { %1449 = vmatpush.msra.mxu2 %v1402_v45  ;;  %v1485_v45 = vld [vmem:[%s2281_s16 + $0x90] sm:$0xff] }
 0x46b   : > { %1450 = vmatpush.msra.mxu2 %v1400_v47  ;;  %v1484_v47 = vld [vmem:[%s2281_s16 + $0x88] sm:$0xff] }
 0x476   : > { %1247 = vrot.lane.b32.xlu2 %v2349_v40, %s2102_s29 }
 0x48f   : > { %v1087_v13 = vpop.f32.mrf.mxu0 }
 0x4d1   : > { %v1188_v62 = vpop.xlane.xlu2 %1187 }
 0x4d2   : > { %2025 = vrcp.f32 %v1188_v62  ;;  %v1215_v3 = vand.u32 2147483648, %v1188_v62  ;;  %v1213_v5 = vand.u32 2147483647, %v1188_v62  ;;  %vm1209_vm5 = vweird.f32 %v1188_v62 }
 0x4d3   : > { %2027 = vrcp.f32 %v2103_v27  ;;  %v1494_v27 = vld [vmem:[%s2281_s16 + $0xd8] sm:$0xff] }
 0x4d4   : > { %v1216_v7 = vor.u32 1.1754944e-38, %v1215_v3  ;;  %vm1214_vm7 = vcmp.eq.f32.partialorder %v1213_v5, 8.507059e+37 }
 0x4d8   : > { %v2026_v0 = vpop.eup %2025 }
 0x4d9   : > { %v1205_v1 = vmul.f32 %v2026_v0, %v1188_v62  ;;  %v1248_v2 = vpop.permute.xlu2 %1247  ;;  %vm1210_vm1 = vweird.f32 %v2026_v0  ;;  %v2028_v28 = vpop.eup %2027 }
 0x4da   : > { %1268 = vmatpush.msra.mxu3 %v1248_v2  ;;  %vm1211_vm6 = vmor %vm1209_vm5, %vm1210_vm1  ;;  %v1333_v29 = vmul.f32 64.0, %v2028_v28 }
 0x4db   : > { %v1206_v40 = vsub.f32 1.0, %v1205_v1 }
 0x4dc   : > { %v1334_v30 = vsub.f32 1.0, %v1333_v29  ;;  %1503 = vmatpush.msrb.mxu3 %v1482_v12  ;;  %v1493_v29 = vld [vmem:[%s2281_s16 + $0xd0] sm:$0xff] }
 0x4dd   : > { %v1207_v4 = vmul.f32 %v2026_v0, %v1206_v40 }
 0x4de   : > { %v1335_v31 = vmul.f32 %v2028_v28, %v1334_v30  ;;  %v1473_v30 = vld [vmem:[%s2281_s16 + $0x30] sm:$0xff] }
 0x4df   : > { %v1208_v6 = vadd.f32 %v2026_v0, %v1207_v4 }
 0x4e0   : > { %v1336_v32 = vadd.f32 %v2028_v28, %v1335_v31  ;;  %v1492_v31 = vld [vmem:[%s2281_s16 + $0xc8] sm:$0xff] }
 0x4e1   : > { %v1212_v8 = vsel %vm1211_vm6, %v2026_v0, %v1208_v6  ;;  %v2443_v6 = vld [vmem:[%s2641_s2] ss:$0 sm:$0xff] }
 0x4e2   : > { %v1217_v9 = vsel %vm1214_vm7, %v1216_v7, %v1212_v8 }
 0x4e3   : > { %v1218_v10 = vmul.f32 %v2024_v48, %v1217_v9  ;;  %v1398_v48 = vld [vmem:[%s2270_s21 + $0x48] sm:$0xff]  ;;  %v2451_v9 = vld [vmem:[%s2642_s19] ss:$0 sm:$0xff] }
 0x4e4   : > { %1451 = vmatpush.msra.mxu2 %v1398_v48  ;;  %v1483_v48 = vld [vmem:[%s2281_s16 + $0x80] sm:$0xff] }
 0x4e5   : > { %1939 = vmatmul.msk.f32.vlgmr.msra.gmra.mxu3 %vm1018_vm4, %v1218_v10  ;;  %vm1337_vm4 = vweird.f32 %v2028_v28 }
 0x4e6   : > { %v2405_v33 = vsel %vm1337_vm4, %v2028_v28, %v1336_v32  ;;  %1452 = vmatpush.msra.mxu2 %v1396_v50  ;;  %v1474_v28 = vld [vmem:[%s2281_s16 + $0x38] sm:$0xff]  ;;  %v1472_v32 = vld [vmem:[%s2281_s16 + $0x28] sm:$0xff] }
 0x4e8   : > { %1453 = vmatpush.msra.mxu2 %v1394_v52 }
 0x4e9   : > { %v1243_v11 = vpop.f32.mrf.mxu2 }
 0x4ea   : > { %1275 = vrot.lane.b32.xlu0 %v1243_v11, %s2100_s30  ;;  %1454 = vmatpush.msra.mxu2 %v1392_v54 }
 0x4ec   : > { %1455 = vmatpush.msra.mxu2 %v1390_v56 }
 0x55c   : > { %v1276_v14 = vpop.permute.xlu0 %1275 }
 0x55d   : > { %v1281_v15 = vsel %vm964_vm3, %v1087_v13, %v1276_v14  ;;  %v1481_v13 = vld [vmem:[%s2281_s16 + $0x70] sm:$0xff]  ;;  %v1480_v14 = vld [vmem:[%s2281_s16 + $0x68] sm:$0xff] }
 0x55e   : > { %1940 = vmatmul.msk.f32.vlgmr.msrb.gmra.mxu0 %vm908_vm2, %v1281_v15  ;;  %1504 = vmatpush.msrb.mxu3 %v1481_v13  ;;  %v1479_v15 = vld [vmem:[%s2281_s16 + $0x60] sm:$0xff] }
 0x560   : > { %1505 = vmatpush.msrb.mxu3 %v1480_v14 }
 0x562   : > { %1506 = vmatpush.msrb.mxu3 %v1479_v15 }
 0x568   : > { %v1270_v16 = vpop.f32.mrf.mxu3 }
 0x569   : > { %1277 = vrot.lane.b32.xlu1 %v1270_v16, %s2100_s30  ;;  %v1498_v16 = vld [vmem:[%s2281_s16 + $0xf8] sm:$0xff] }
 0x56a   : > { %1526 = vmatpush.msra.mxu0 %v1498_v16 }
 0x5db   : > { %v1278_v18 = vpop.permute.xlu1 %1277  ;;  %v1318_v21 = vpop.f32.mrf.mxu0 }
 0x5dc   : > { %v1319_v22 = vadd.f32 %v2005_v17, %v1318_v21  ;;  %v1282_v23 = vsel %vm964_vm3, %v2371_v19, %v1278_v18  ;;  %v1497_v18 = vld [vmem:[%s2281_s16 + $0xf0] sm:$0xff] }
 0x5dd   : > { %1941 = vmatmul.msk.f32.gmra.mxu0 %vm908_vm2, %v1282_v23  ;;  %v1477_v21 = vld [vmem:[%s2281_s16 + $0x50] sm:$0xff]  ;;  %v1476_v23 = vld [vmem:[%s2281_s16 + $0x48] sm:$0xff] }
 0x5de   : > { %v1324_v24 = vadd.f32 %v1319_v22, %v2322_v20  ;;  %1527 = vmatpush.msra.mxu0 %v1497_v18  ;;  %v1496_v22 = vld [vmem:[%s2281_s16 + $0xe8] sm:$0xff] }
 0x5e0   : > { %v1326_v26 = vsel %vm908_vm2, %v1324_v24, 0.0  ;;  %1528 = vmatpush.msra.mxu0 %v1496_v22 }
 0x5e1   : > { %1327 = vadd.xlane.f32.xlu0 %v1326_v26  ;;  %v1475_v26 = vld [vmem:[%s2281_s16 + $0x40] sm:$0xff] }
 0x654   : > { %v1328_v19 = vpop.xlane.xlu0 %1327 }
 0x655   : > { %v1339_v20 = vmul.f32 %v2405_v33, %v1328_v19  ;;  %v1491_v19 = vld [vmem:[%s2281_s16 + $0xc0] sm:$0xff] }
 0x657   : > { %v2408_v34 = vsub.f32 %v1324_v24, %v1339_v20  ;;  %v1495_v24 = vld [vmem:[%s2281_s16 + $0xe0] sm:$0xff] }
 0x658   : > { %1529 = vmatpush.msra.mxu0 %v1495_v24  ;;  %v1471_v20 = vld [vmem:[%s2281_s16 + $0x20] sm:$0xff] }
 0x659   : > { %v1343_v35 = vmul.f32 %v2408_v34, %v2408_v34 }
 0x65a   : > { %v1321_v36 = vpop.f32.mrf.mxu0  ;;  %1530 = vmatpush.msra.mxu0 %v1494_v27 }
 0x65b   : > { %v1322_v37 = vadd.f32 %v2005_v17, %v1321_v36  ;;  %v1345_v38 = vsel %vm908_vm2, %v1343_v35, 0.0  ;;  %v1478_v17 = vld [vmem:[%s2281_s16 + $0x58] sm:$0xff]  ;;  %v1489_v36 = vld [vmem:[%s2281_s16 + $0xb0] sm:$0xff] }
 0x65c   : > { %1346 = vadd.xlane.f32.xlu1 %v1345_v38  ;;  %1507 = vmatpush.msrb.mxu3 %v1478_v17  ;;  %v1470_v35 = vld [vmem:[%s2281_s16 + $0x18] sm:$0xff]  ;;  %v1488_v38 = vld [vmem:[%s2281_s16 + $0xa8] sm:$0xff] }
 0x65d   : > { %v1325_v39 = vadd.f32 %v1322_v37, %v2330_v25  ;;  %v1397_v25 = vld [vmem:[%s2270_s21 + $0x40] sm:$0xff]  ;;  %1531 = vmatpush.msra.mxu0 %v1493_v29  ;;  %v1469_v37 = vld [vmem:[%s2281_s16 + $0x10] sm:$0xff] }
 0x65e   : > { %1428 = vmatpush.msra.mxu1 %v1397_v25  ;;  %1508 = vmatpush.msrb.mxu3 %v1477_v21 }
 0x65f   : > { %v1329_v41 = vsel %vm908_vm2, %v1325_v39, 0.0  ;;  %1532 = vmatpush.msra.mxu0 %v1492_v31 }
 0x660   : > { %1330 = vadd.xlane.f32.xlu2 %v1329_v41  ;;  %1429 = vmatpush.msra.mxu1 %v1395_v49  ;;  %v1487_v41 = vld [vmem:[%s2281_s16 + $0xa0] sm:$0xff] }
 0x661   : > { %1509 = vmatpush.msrb.mxu3 %v1476_v23  ;;  %1533 = vmatpush.msra.mxu0 %v1491_v19 }
 0x662   : > { %1430 = vmatpush.msra.mxu1 %v1393_v51 }
 0x663   : > { %1510 = vmatpush.msrb.mxu3 %v1475_v26 }
 0x664   : > { %1431 = vmatpush.msra.mxu1 %v1391_v53 }
 0x665   : > { %1511 = vmatpush.msrb.mxu3 %v1474_v28 }
 0x666   : > { %1432 = vmatpush.msra.mxu1 %v1389_v55  ;;  %v1405_v55 = vld [vmem:[%s2275_s20] sm:$0x3] }
 0x667   : > { %1512 = vmatpush.msrb.mxu3 %v1473_v30 }
 0x669   : > { %1513 = vmatpush.msrb.mxu3 %v1472_v32 }
 0x66b   : > { %1514 = vmatpush.msrb.mxu3 %v1471_v20 }
 0x66d   : > { %1515 = vmatpush.msrb.mxu3 %v1470_v35 }
 0x66f   : > { %1516 = vmatpush.msrb.mxu3 %v1469_v37 }
 0x6cf   : > { %v1347_v57 = vpop.xlane.xlu1 %1346 }
 0x6d0   : > { %v1351_v58 = vmul.f32 %v1347_v57, %v2405_v33 }
 0x6d2   : > { %v1353_v59 = vadd.f32 1e-05, %v1351_v58  ;;  %v1407_v58 = vperm.slane %v1405_v55, 0 }
 0x6d3   : > { %v1331_v60 = vpop.xlane.xlu2 %1330 }
 0x6d4   : > { %2029 = vrsqrt.f32 %v1353_v59  ;;  %v1340_v62 = vmul.f32 %v2405_v33, %v1331_v60  ;;  %vm1361_vm8 = vweird.f32 %v1353_v59 }
 0x6d6   : > { %v2433_v63 = vsub.f32 %v1325_v39, %v1340_v62  ;;  %v1468_v39 = vld [vmem:[%s2281_s16 + $0x8] sm:$0xff] }
 0x6d7   : > { %1517 = vmatpush.msrb.mxu3 %v1468_v39 }
 0x6d8   : > { %v1344_v61 = vmul.f32 %v2433_v63, %v2433_v63 }
 0x6d9   : > { %1518 = vmatpush.msrb.mxu3 %v1467_v42 }
 0x6da   : > { %v2030_v0 = vpop.eup %2029  ;;  %v1348_v1 = vsel %vm908_vm2, %v1344_v61, 0.0 }
 0x6db   : > { %v1356_v2 = vmul.f32 %v2030_v0, %v1353_v59  ;;  %1349 = vadd.xlane.f32.xlu0 %v1348_v1  ;;  %vm1362_vm3 = vweird.f32 %v2030_v0  ;;  %v1408_v1 = vperm.slane %v1405_v55, 1 }
 0x6dc   : > { %vm1363_vm9 = vmor %vm1361_vm8, %vm1362_vm3 }
 0x6dd   : > { %v1357_v40 = vmul.f32 %v2030_v0, %v1356_v2 }
 0x6df   : > { %v1358_v3 = vmul.f32 0.5, %v1357_v40 }
 0x6e1   : > { %v1359_v4 = vsub.f32 1.5, %v1358_v3 }
 0x6e3   : > { %v1360_v5 = vmul.f32 %v2030_v0, %v1359_v4 }
 0x6e5   : > { %v1364_v7 = vsel %vm1363_vm9, %v2030_v0, %v1360_v5 }
 0x6e6   : > { %v1375_v8 = vmul.f32 %v1364_v7, %v2408_v34  ;;  %v1490_v34 = vld [vmem:[%s2281_s16 + $0xb8] sm:$0xff]  ;;  %v2008_v7 = vld [vmem:[%s826_s28] ss:$0 sm:$0xff] }
 0x6e7   : > { %1534 = vmatpush.msra.mxu0 %v1490_v34 }
 0x6e8   : > { %v1381_v10 = vmul.f32 %v2443_v6, %v1375_v8 }
 0x6e9   : > { %1535 = vmatpush.msra.mxu0 %v1489_v36 }
 0x6ea   : > { %v2455_v11 = vadd.f32 %v2451_v9, %v1381_v10 }
 0x6eb   : > { %1536 = vmatpush.msra.mxu0 %v1488_v38 }
 0x6ec   : > { %1942 = vmatmul.msk.f32.vlgmr.msra.gmra.mxu1 %vm908_vm2, %v2455_v11  ;;  %1944 = vmatmul.msk.f32.vlgmr.msra.gmra.mxu2 %vm908_vm2, %v2455_v11 }
 0x6ed   : > { %1537 = vmatpush.msra.mxu0 %v1487_v41 }
 0x6ef   : > { %1538 = vmatpush.msra.mxu0 %v1486_v43 }
 0x6f1   : > { %1539 = vmatpush.msra.mxu0 %v1485_v45 }
 0x6f3   : > { %1540 = vmatpush.msra.mxu0 %v1484_v47 }
 0x6f5   : > { %1541 = vmatpush.msra.mxu0 %v1483_v48 }
 0x74e   : > { %v1350_v44 = vpop.xlane.xlu0 %1349 }
 0x74f   : > { %v1352_v46 = vmul.f32 %v1350_v44, %v2405_v33  ;;  %v2009_v44 = vld [vmem:[%s829_s5] ss:$0 sm:$0xff]  ;;  %s2643_s5 = sld [smem:[#allocation19_spill]] (!%p1946_p6) }
 0x751   : > { %v1354_v25 = vadd.f32 1e-05, %v1352_v46  ;;  %v2010_v46 = vld [vmem:[%s832_s22] ss:$0 sm:$0xff]  ;;  %s2645_s22 = sld [smem:[#allocation18_spill]] (!%p1946_p6) }
 0x753   : > { %2031 = vrsqrt.f32 %v1354_v25  ;;  %vm1371_vm11 = vweird.f32 %v1354_v25 }
 0x759   : > { %v2032_v49 = vpop.eup %2031 }
 0x75a   : > { %v1366_v50 = vmul.f32 %v2032_v49, %v1354_v25  ;;  %vm1372_vm10 = vweird.f32 %v2032_v49 }
 0x75b   : > { %vm1373_vm12 = vmor %vm1371_vm11, %vm1372_vm10 }
 0x75c   : > { %v1367_v51 = vmul.f32 %v2032_v49, %v1366_v50 }
 0x75e   : > { %v1368_v52 = vmul.f32 0.5, %v1367_v51 }
 0x760   : > { %v1369_v53 = vsub.f32 1.5, %v1368_v52 }
 0x762   : > { %v1370_v54 = vmul.f32 %v2032_v49, %v1369_v53 }
 0x764   : > { %v1374_v56 = vsel %vm1373_vm12, %v2032_v49, %v1370_v54 }
 0x765   : > { %v1376_v57 = vmul.f32 %v1374_v56, %v2433_v63 }
 0x767   : > { %v1382_v59 = vmul.f32 %v2443_v6, %v1376_v57 }
 0x769   : > { %v1434_v60 = vpop.f32.mrf.mxu1  ;;  %v1388_v62 = vadd.f32 %v2451_v9, %v1382_v59 }
 0x76a   : > { %v1435_v61 = vadd.f32 %v1434_v60, %v1407_v58 }
 0x76b   : > { %1943 = vmatmul.msk.f32.gmra.mxu1 %vm908_vm2, %v1388_v62  ;;  %1945 = vmatmul.msk.f32.gmra.mxu2 %vm908_vm2, %v1388_v62 }
 0x76c   : > { %v1463_v0 = vmax.f32 %v1435_v61, 0.0 }
 0x76e   : > { %1519 = vmatmul.f32.vlgmr.msrb.gmra.mxu3 %v1463_v0 }
 0x76f   : > { %v1457_v2 = vpop.f32.mrf.mxu2 }
 0x770   : > { %v1458_v40 = vadd.f32 %v1457_v2, %v1408_v1 }
 0x772   : > { %v1464_v3 = vmax.f32 %v1458_v40, 0.0 }
 0x774   : > { %1542 = vmatmul.f32.vlgmr.msra.gmra.mxu0 %v1464_v3 }
 0x7e8   : > { %v1437_v63 = vpop.f32.mrf.mxu1 }
 0x7e9   : > { %v1438_v4 = vadd.f32 %v1437_v63, %v1407_v58 }
 0x7eb   : > { %v1465_v5 = vmax.f32 %v1438_v4, 0.0 }
 0x7ed   : > { %1522 = vmatmul.f32.gmra.mxu3 %v1465_v5 }
 0x7ee   : > { %v1460_v6 = vpop.f32.mrf.mxu2 }
 0x7ef   : > { %v1461_v8 = vadd.f32 %v1460_v6, %v1408_v1 }
 0x7f1   : > { %v1466_v9 = vmax.f32 %v1461_v8, 0.0  ;;  %v1520_v10 = vpop.f32.mrf.mxu3  ;;  %v1543_v13 = vpop.f32.mrf.mxu0 }
 0x7f2   : > { %v1521_v12 = vadd.f32 %v2008_v7, %v1520_v10 }
 0x7f3   : > { %1545 = vmatmul.f32.gmra.mxu0 %v1466_v9 }
 0x7f4   : > { %v1544_v14 = vadd.f32 %v1543_v13, %v1521_v12 }
 0x7f6   : > { %v1549_v15 = vadd.f32 %v1544_v14, %v2455_v11 }
 0x7f8   : > { %v1551_v16 = vsel %vm908_vm2, %v1549_v15, 0.0 }
 0x7f9   : > { %1552 = vadd.xlane.f32.xlu2 %v1551_v16 }
 0x86c   : > { %v1553_v17 = vpop.xlane.xlu2 %1552 }
 0x86d   : > { %v1557_v18 = vmul.f32 %v1553_v17, %v2405_v33 }
 0x86f   : > { %v1559_v21 = vsub.f32 %v1549_v15, %v1557_v18 }
 0x870   : > { %v1523_v22 = vpop.f32.mrf.mxu3  ;;  %v1546_v26 = vpop.f32.mrf.mxu0 }
 0x871   : > { %v1524_v23 = vadd.f32 %v2008_v7, %v1523_v22  ;;  %v1561_v24 = vmul.f32 %v1559_v21, %v1559_v21 }
 0x873   : > { %v1547_v27 = vadd.f32 %v1546_v26, %v1524_v23  ;;  %v1563_v28 = vsel %vm908_vm2, %v1561_v24, 0.0 }
 0x874   : > { %1564 = vadd.xlane.f32.xlu2 %v1563_v28 }
 0x875   : > { %v1550_v29 = vadd.f32 %v1547_v27, %v1388_v62 }
 0x877   : > { %v1554_v30 = vsel %vm908_vm2, %v1550_v29, 0.0 }
 0x878   : > { %1555 = vadd.xlane.f32.xlu0 %v1554_v30 }
 0x8e7   : > { %v1565_v11 = vpop.xlane.xlu2 %1564 }
 0x8e8   : > { %v1569_v31 = vmul.f32 %v1565_v11, %v2405_v33 }
 0x8ea   : > { %v1571_v32 = vadd.f32 1e-05, %v1569_v31 }
 0x8eb   : > { %v1556_v19 = vpop.xlane.xlu0 %1555 }
 0x8ec   : > { %2033 = vrsqrt.f32 %v1571_v32  ;;  %v1558_v20 = vmul.f32 %v1556_v19, %v2405_v33  ;;  %vm1579_vm14 = vweird.f32 %v1571_v32 }
 0x8ee   : > { %v1560_v34 = vsub.f32 %v1550_v29, %v1558_v20 }
 0x8f0   : > { %v1562_v35 = vmul.f32 %v1560_v34, %v1560_v34 }
 0x8f2   : > { %v2034_v36 = vpop.eup %2033  ;;  %v1566_v37 = vsel %vm908_vm2, %v1562_v35, 0.0 }
 0x8f3   : > { %v1574_v38 = vmul.f32 %v2034_v36, %v1571_v32  ;;  %1567 = vadd.xlane.f32.xlu0 %v1566_v37  ;;  %vm1580_vm13 = vweird.f32 %v2034_v36 }
 0x8f4   : > { %vm1581_vm15 = vmor %vm1579_vm14, %vm1580_vm13 }
 0x8f5   : > { %v1575_v39 = vmul.f32 %v2034_v36, %v1574_v38 }
 0x8f7   : > { %v1576_v41 = vmul.f32 0.5, %v1575_v39 }
 0x8f9   : > { %v1577_v42 = vsub.f32 1.5, %v1576_v41 }
 0x8fb   : > { %v1578_v43 = vmul.f32 %v2034_v36, %v1577_v42 }
 0x8fd   : > { %v1582_v45 = vsel %vm1581_vm15, %v2034_v36, %v1578_v43 }
 0x8fe   : > { %v1593_v47 = vmul.f32 %v1582_v45, %v1559_v21 }
 0x900   : > { %v1599_v25 = vmul.f32 %v2009_v44, %v1593_v47 }
 0x902   : > { %v1605_v48 = vadd.f32 %v2010_v46, %v1599_v25 }
 0x904   : > { %1607 = vst.msk [vmem:[#allocation2] sm:$0xff] %vm908_vm2, %v1605_v48 }
 0x966   : > { %v1568_v49 = vpop.xlane.xlu0 %1567 }
 0x967   : > { %v1570_v50 = vmul.f32 %v1568_v49, %v2405_v33 }
 0x969   : > { %v1572_v51 = vadd.f32 1e-05, %v1570_v50 }
 0x96b   : > { %2035 = vrsqrt.f32 %v1572_v51  ;;  %vm1589_vm1 = vweird.f32 %v1572_v51 }
 0x971   : > { %v2036_v52 = vpop.eup %2035 }
 0x972   : > { %v1584_v53 = vmul.f32 %v2036_v52, %v1572_v51  ;;  %vm1590_vm0 = vweird.f32 %v2036_v52 }
 0x973   : > { %vm1591_vm5 = vmor %vm1589_vm1, %vm1590_vm0 }
 0x974   : > { %v1585_v54 = vmul.f32 %v2036_v52, %v1584_v53 }
 0x976   : > { %v1586_v55 = vmul.f32 0.5, %v1585_v54 }
 0x978   : > { %v1587_v56 = vsub.f32 1.5, %v1586_v55 }
 0x97a   : > { %v1588_v57 = vmul.f32 %v2036_v52, %v1587_v56 }
 0x97c   : > { %v1592_v58 = vsel %vm1591_vm5, %v2036_v52, %v1588_v57 }
 0x97d   : > { %v1594_v59 = vmul.f32 %v1592_v58, %v1560_v34 }
 0x97f   : > { %v1600_v60 = vmul.f32 %v2009_v44, %v1594_v59  ;;  %1612 = sbr.rel (%p1946_p6) target bundleno = 2841 (0xb19), region = 108 }
 0x981   : > { %v1606_v62 = vadd.f32 %v2010_v46, %v1600_v60 }
 0x983   : > { %1608 = vst.msk [vmem:[#allocation2 + $0x8] sm:$0xff] %vm908_vm2, %v1606_v62 }
 0x984   : > { %v1613_v61 = vsel %vm908_vm2, %v1605_v48, 0.0  ;;  %v1616_v0 = vsel %vm908_vm2, %v1606_v62, 0.0  ;;  %v1676_v9 = vld [vmem:[%s2643_s5 + $0x38] sm:$0xff]  ;;  %v1675_v10 = vld [vmem:[%s2643_s5 + $0x30] sm:$0xff]  ;;  %v1674_v12 = vld [vmem:[%s2643_s5 + $0x28] sm:$0xff]  ;;  %vm1710_vm10 = vcmask 130048  }
 0x985   : > { %1614 = vadd.xlane.f32.xlu0 %v1613_v61  ;;  %1695 = vmatpush.msra.mxu0 %v1676_v9  ;;  %v1673_v13 = vld [vmem:[%s2643_s5 + $0x20] sm:$0xff]  ;;  %v1672_v14 = vld [vmem:[%s2643_s5 + $0x18] sm:$0xff]  ;;  %v1671_v15 = vld [vmem:[%s2643_s5 + $0x10] sm:$0xff] }
 0x986   : > { %1959 = vmatpush.msra.mxu1 %v1676_v9  ;;  %v1670_v16 = vld [vmem:[%s2643_s5 + $0x8] sm:$0xff]  ;;  %v1669_v17 = vld [vmem:[%s2643_s5] sm:$0xff] }
 0x987   : > { %1696 = vmatpush.msra.mxu0 %v1675_v10  ;;  %v2037_v20 = vld [vmem:[%s2644_s4] ss:$0 sm:$0xff] }
 0x988   : > { %1960 = vmatpush.msra.mxu1 %v1675_v10  ;;  %v2038_v36 = vld [vmem:[%s2645_s22] ss:$0 sm:$0xff] }
 0x989   : > { %1697 = vmatpush.msra.mxu0 %v1674_v12  ;;  %v2039_v47 = vld [vmem:[%s2646_s0] ss:$0 sm:$0xff] }
 0x98a   : > { %1961 = vmatpush.msra.mxu1 %v1674_v12 }
 0x98b   : > { %1698 = vmatpush.msra.mxu0 %v1673_v13 }
 0x98c   : > { %1962 = vmatpush.msra.mxu1 %v1673_v13 }
 0x98d   : > { %1617 = vadd.xlane.f32.xlu0 %v1616_v0  ;;  %1699 = vmatpush.msra.mxu0 %v1672_v14 }
 0x98e   : > { %1963 = vmatpush.msra.mxu1 %v1672_v14 }
 0x98f   : > { %1700 = vmatpush.msra.mxu0 %v1671_v15 }
 0x990   : > { %1964 = vmatpush.msra.mxu1 %v1671_v15 }
 0x991   : > { %1701 = vmatpush.msra.mxu0 %v1670_v16 }
 0x992   : > { %1965 = vmatpush.msra.mxu1 %v1670_v16 }
 0x993   : > { %1702 = vmatpush.msra.mxu0 %v1669_v17 }
 0x994   : > { %1966 = vmatpush.msra.mxu1 %v1669_v17 }
 0x9f8   : > { %v1615_v1 = vpop.xlane.xlu0 %1614 }
 0x9f9   : > { %v1619_v2 = vmul.f32 %v1615_v1, %v2405_v33 }
 0x9fb   : > { %v1621_v40 = vsub.f32 %v1605_v48, %v1619_v2 }
 0x9fd   : > { %v1623_v3 = vmul.f32 %v1621_v40, %v1621_v40 }
 0x9ff   : > { %v1625_v63 = vsel %vm908_vm2, %v1623_v3, 0.0 }
 0xa00   : > { %1626 = vadd.xlane.f32.xlu1 %v1625_v63  ;;  %v1618_v4 = vpop.xlane.xlu0 %1617 }
 0xa01   : > { %v1620_v5 = vmul.f32 %v1618_v4, %v2405_v33 }
 0xa03   : > { %v2532_v6 = vsub.f32 %v1606_v62, %v1620_v5 }
 0xa05   : > { %v1624_v7 = vmul.f32 %v2532_v6, %v2532_v6 }
 0xa07   : > { %v1628_v8 = vsel %vm908_vm2, %v1624_v7, 0.0 }
 0xa08   : > { %1629 = vadd.xlane.f32.xlu1 %v1628_v8 }
 0xa73   : > { %v1627_v18 = vpop.xlane.xlu1 %1626 }
 0xa74   : > { %v1631_v21 = vmul.f32 %v1627_v18, %v2405_v33 }
 0xa76   : > { %v1633_v22 = vadd.f32 1e-05, %v1631_v21 }
 0xa78   : > { %2040 = vrsqrt.f32 %v1633_v22  ;;  %vm1641_vm7 = vweird.f32 %v1633_v22 }
 0xa7b   : > { %v1630_v23 = vpop.xlane.xlu1 %1629 }
 0xa7c   : > { %v1632_v24 = vmul.f32 %v1630_v23, %v2405_v33 }
 0xa7e   : > { %v2041_v26 = vpop.eup %2040  ;;  %v1634_v27 = vadd.f32 1e-05, %v1632_v24 }
 0xa7f   : > { %v1636_v28 = vmul.f32 %v2041_v26, %v1633_v22  ;;  %vm1642_vm6 = vweird.f32 %v2041_v26 }
 0xa80   : > { %2042 = vrsqrt.f32 %v1634_v27  ;;  %vm1643_vm4 = vmor %vm1641_vm7, %vm1642_vm6  ;;  %vm1651_vm8 = vweird.f32 %v1634_v27 }
 0xa81   : > { %v1637_v29 = vmul.f32 %v2041_v26, %v1636_v28 }
 0xa83   : > { %v1638_v30 = vmul.f32 0.5, %v1637_v29 }
 0xa85   : > { %v1639_v11 = vsub.f32 1.5, %v1638_v30 }
 0xa86   : > { %v2043_v31 = vpop.eup %2042 }
 0xa87   : > { %v1640_v32 = vmul.f32 %v2041_v26, %v1639_v11  ;;  %v1646_v19 = vmul.f32 %v2043_v31, %v1634_v27  ;;  %vm1652_vm3 = vweird.f32 %v2043_v31 }
 0xa88   : > { %vm1653_vm9 = vmor %vm1651_vm8, %vm1652_vm3 }
 0xa89   : > { %v1647_v34 = vmul.f32 %v2043_v31, %v1646_v19  ;;  %v1644_v35 = vsel %vm1643_vm4, %v2041_v26, %v1640_v32 }
 0xa8a   : > { %v1655_v33 = vmul.f32 %v1644_v35, %v1621_v40 }
 0xa8b   : > { %v1648_v37 = vmul.f32 0.5, %v1647_v34 }
 0xa8c   : > { %v1661_v38 = vmul.f32 %v2037_v20, %v1655_v33 }
 0xa8d   : > { %v1649_v39 = vsub.f32 1.5, %v1648_v37 }
 0xa8e   : > { %v1667_v41 = vadd.f32 %v2038_v36, %v1661_v38 }
 0xa8f   : > { %v1650_v42 = vmul.f32 %v2043_v31, %v1649_v39 }
 0xa90   : > { %1947 = vmatmul.msk.f32.vlgmr.msra.gmra.mxu0 %vm908_vm2, %v1667_v41 }
 0xa91   : > { %v1654_v43 = vsel %vm1653_vm9, %v2043_v31, %v1650_v42 }
 0xa92   : > { %v1656_v44 = vmul.f32 %v1654_v43, %v2532_v6 }
 0xa94   : > { %v1662_v45 = vmul.f32 %v2037_v20, %v1656_v44 }
 0xa96   : > { %v1668_v46 = vadd.f32 %v2038_v36, %v1662_v45 }
 0xa98   : > { %1948 = vmatmul.msk.f32.vlgmr.msra.gmra.mxu1 %vm908_vm2, %v1668_v46 }
 0xb0d   : > { %v1704_v25 = vpop.f32.mrf.mxu0 }
 0xb0e   : > { %v1705_v48 = vadd.f32 %v2039_v47, %v1704_v25 }
 0xb10   : > { %1711 = vst.msk [vmem:[#allocation3] sm:$0xff] %vm1710_vm10, %v1705_v48 }
 0xb15   : > { %v1707_v49 = vpop.f32.mrf.mxu1 }
 0xb16   : > { %v1708_v50 = vadd.f32 %v2039_v47, %v1707_v49 }
 0xb18   : > { %1712 = vst.msk [vmem:[#allocation3 + $0x8] sm:$0xff] %vm1710_vm10, %v1708_v50 }
 0xb19 PF: > { %s2647_s26 = sld [smem:[#allocation7_spill]]  ;;  %s2104_s19 = smov [#allocation3]  }
 0xb1a   : > { %s2649_s6 = sld [smem:[#allocation21_spill]]  ;;  %s1721_s20 = sshll.u32 %s2104_s19, 4  ;;  %s1722_s20 = int_to_ptr.vmem [resolvable:$true] %s1721_s20 }
 0xb1b   : > { %s2105_s16 = smov 128   ;;  %s2106_s28 = smov 8  }
 0xb1f   : > { %s2648_s17 = sadd.s32 4294967295, %s2647_s26  }
 0xb20   : > { %p1971_p7 = scmp.eq.s32.totalorder %s2648_s17, 5  ;;  %s1723_s23 = sshll.u32 %s2649_s6, 4  ;;  %s1724_s23 = int_to_ptr.hbm [resolvable:$true] %s1723_s23 }
 0xb22   : > { %1968 = dma.vmem_to_hbm [thread:$0]  (%p1971_p7), %s1722_s20, 256, %s1724_s23, [#allocation4], %s2105_s16, %s2105_s16, %s2106_s28  }
 0xb23   : > { %2085 = dma.done.wait (%p1971_p7), [#allocation4], 256  }
 0xb24   : > { %2087 = vsyncadd (%p1971_p7), [#allocation4], 4294967040 }
 0xb25 PF: > { %s2650_s27 = sld [smem:[#allocation7_spill]] }
 0xb26   : > { %s2651_s1 = sld [smem:[#allocation6_spill]] }
 0xb27   : > { %s2652_s22 = sld [smem:[#allocation8_spill]] }
 0xb2b   : > { %s31_s23 = sadd.s32 1, %s2650_s27  }
 0xb2c   : > { %p28_p8 = scmp.ge.s32.totalorder %s31_s23, 8  }
 0xb2e   :  { %30 = sbr.rel (!%p28_p8) target bundleno = 15 (0xf), region = 172 }
 0xb33   :  { %1740 = vsyncpa [#allocation4], 1 }
 0xb34   :  { %1742 = vsyncpa [#allocation4 + $0x1], 1 }

</bundles_post_ra>
